<compile_context>
chip_gen: v7x
topology: tpu7x:2x2x1
jax: 0.10.0
libtpu: 0.0.40
codegen_flags: <defaults>
</compile_context>

<pallas_src>
import math
import functools

import jax
import jax.numpy as jnp
from jax.experimental import pallas as pl
from jax.experimental.pallas import tpu as pltpu


# ----------------------------- small model config -----------------------------
HIDDEN = 32          # n_embd
N_LAYERS = 2         # n_layer
N_HEADS = 2          # n_head
MAX_SEQ = 16         # n_positions
VOCAB = 128          # vocab_size (lane-dense LM-head output)
BATCH = 2
SEQ = 8
LN_EPS = 1e-5

# Order of weight operands passed to the kernel (after x and mask).
WEIGHT_NAMES = ("ln1_g", "ln1_b",
                "w_q", "w_k", "w_v", "b_q", "b_k", "b_v",
                "w_proj", "b_proj",
                "ln2_g", "ln2_b",
                "w_fc", "b_fc", "w_fc2", "b_fc2",
                "lnf_g", "lnf_b", "wte_t")


# ------------------------------ in-kernel helpers ------------------------------
def _layernorm(x, g, b, eps=LN_EPS):
    mu = jnp.mean(x, axis=-1, keepdims=True)
    var = jnp.mean((x - mu) ** 2, axis=-1, keepdims=True)
    return (x - mu) * jax.lax.rsqrt(var + eps) * g + b


def _gelu_new(x):
    # HF GPT2 "gelu_new" (tanh approximation), kept in f32.
    c = math.sqrt(2.0 / math.pi)
    return 0.5 * x * (1.0 + jnp.tanh(c * (x + 0.044715 * x * x * x)))


# ------------------------------ fused forward kernel ------------------------------
def gpt2_forward_kernel(num_heads, n_layers,
                        x_ref, mask_ref,
                        ln1_g_ref, ln1_b_ref,
                        w_q_ref, w_k_ref, w_v_ref,
                        b_q_ref, b_k_ref, b_v_ref,
                        w_proj_ref, b_proj_ref,
                        ln2_g_ref, ln2_b_ref,
                        w_fc_ref, b_fc_ref, w_fc2_ref, b_fc2_ref,
                        lnf_g_ref, lnf_b_ref, wte_t_ref,
                        out_ref):
    S, H = x_ref.shape
    nh = num_heads
    bf16 = jnp.bfloat16
    f32 = jnp.float32

    x = x_ref[...]          # (S, H) f32 activations for this batch element
    mask = mask_ref[0]      # (S, S) f32 additive mask (broadcast over heads)

    for l in range(n_layers):                      # static layer loop, weights resident
        # ---------------- attention ----------------
        h1 = _layernorm(x, ln1_g_ref[l], ln1_b_ref[l])
        # one broadcast of the (bf16) activations over the head axis, reused 3x
        h1b = jnp.broadcast_to(h1.astype(bf16), (nh, S, H))

        # head-major batched projections: (nh,S,H) x (nh,H,hd) -> (nh,S,hd)
        q = jnp.einsum('nsh,nhd->nsd', h1b, w_q_ref[l],
                       preferred_element_type=f32) + b_q_ref[l]   # 1/sqrt(hd) folded into w_q
        k = jnp.einsum('nsh,nhd->nsd', h1b, w_k_ref[l],
                       preferred_element_type=f32) + b_k_ref[l]
        v = jnp.einsum('nsh,nhd->nsd', h1b, w_v_ref[l],
                       preferred_element_type=f32) + b_v_ref[l]

        # scores / softmax in f32
        s = jnp.einsum('nqd,nkd->nqk', q.astype(bf16), k.astype(bf16),
                       preferred_element_type=f32)                 # (nh, S, S)
        s = s + mask
        s = s - jnp.max(s, axis=-1, keepdims=True)
        p = jnp.exp(s)
        p = p * pl.reciprocal(jnp.sum(p, axis=-1, keepdims=True), approx=True)

        ctx = jnp.einsum('nqk,nkd->nqd', p.astype(bf16), v.astype(bf16),
                         preferred_element_type=f32)               # (nh, S, hd)

        # per-head output projection + sum over heads == concat-then-project
        proj = jnp.einsum('nsd,ndh->nsh', ctx.astype(bf16), w_proj_ref[l],
                          preferred_element_type=f32)              # (nh, S, H)
        proj = jnp.sum(proj, axis=0) + b_proj_ref[l]               # (S, H)
        x = x + proj

        # ---------------- MLP ----------------
        h2 = _layernorm(x, ln2_g_ref[l], ln2_b_ref[l])
        fc = jnp.dot(h2.astype(bf16), w_fc_ref[l],
                     preferred_element_type=f32) + b_fc_ref[l]     # (S, 4H)
        act = _gelu_new(fc)
        mlp = jnp.dot(act.astype(bf16), w_fc2_ref[l],
                      preferred_element_type=f32) + b_fc2_ref[l]   # (S, H)
        x = x + mlp

    # ---------------- final LN + tied LM head (lane-dense V=128 store) ----------------
    hF = _layernorm(x, lnf_g_ref[...], lnf_b_ref[...])
    logits = jnp.dot(hF.astype(bf16), wte_t_ref[...],
                     preferred_element_type=f32)                   # (S, V)
    out_ref[...] = logits.astype(out_ref.dtype)


# ------------------------------ parameter init ------------------------------
def init_params(key, hidden=HIDDEN, n_layers=N_LAYERS, n_heads=N_HEADS,
                max_seq=MAX_SEQ, vocab=VOCAB):
    hd = hidden // n_heads
    std = 0.02
    f32, bf16 = jnp.float32, jnp.bfloat16
    keys = jax.random.split(key, 8)

    wte = std * jax.random.normal(keys[0], (vocab, hidden), f32)
    wpe = std * jax.random.normal(keys[1], (max_seq, hidden), f32)

    scale = 1.0 / math.sqrt(hd)   # folded into the Q projection (and its bias)

    # head-major attention weights, bf16 (MXU operands)
    w_q = (std * scale * jax.random.normal(keys[2], (n_layers, n_heads, hidden, hd), f32)).astype(bf16)
    w_k = (std * jax.random.normal(keys[3], (n_layers, n_heads, hidden, hd), f32)).astype(bf16)
    w_v = (std * jax.random.normal(keys[4], (n_layers, n_heads, hidden, hd), f32)).astype(bf16)
    b_q = jnp.zeros((n_layers, n_heads, 1, hd), f32) * scale
    b_k = jnp.zeros((n_layers, n_heads, 1, hd), f32)
    b_v = jnp.zeros((n_layers, n_heads, 1, hd), f32)

    w_proj = (std * jax.random.normal(keys[5], (n_layers, n_heads, hd, hidden), f32)).astype(bf16)
    b_proj = jnp.zeros((n_layers, 1, hidden), f32)

    w_fc = (std * jax.random.normal(keys[6], (n_layers, hidden, 4 * hidden), f32)).astype(bf16)
    b_fc = jnp.zeros((n_layers, 1, 4 * hidden), f32)
    w_fc2 = (std * jax.random.normal(keys[7], (n_layers, 4 * hidden, hidden), f32)).astype(bf16)
    b_fc2 = jnp.zeros((n_layers, 1, hidden), f32)

    ln1_g = jnp.ones((n_layers, 1, hidden), f32)
    ln1_b = jnp.zeros((n_layers, 1, hidden), f32)
    ln2_g = jnp.ones((n_layers, 1, hidden), f32)
    ln2_b = jnp.zeros((n_layers, 1, hidden), f32)
    lnf_g = jnp.ones((1, hidden), f32)
    lnf_b = jnp.zeros((1, hidden), f32)

    return dict(wte=wte, wpe=wpe, wte_t=wte.T.astype(bf16),
                ln1_g=ln1_g, ln1_b=ln1_b,
                w_q=w_q, w_k=w_k, w_v=w_v, b_q=b_q, b_k=b_k, b_v=b_v,
                w_proj=w_proj, b_proj=b_proj,
                ln2_g=ln2_g, ln2_b=ln2_b,
                w_fc=w_fc, b_fc=b_fc, w_fc2=w_fc2, b_fc2=b_fc2,
                lnf_g=lnf_g, lnf_b=lnf_b)


# ------------------------------ full forward ------------------------------
def gpt_lm_forward(params, input_ids, attention_mask):
    B, S = input_ids.shape
    V, H = params["wte"].shape
    L, nh = N_LAYERS, N_HEADS

    # Embedding gather + position embeddings: plain-JAX glue (wrapper side).
    x = params["wte"][input_ids] + params["wpe"][:S][None, :, :]        # (B, S, H) f32
    x2d = x.reshape(B * S, H)                                           # wrapper-side flatten

    # Combined additive mask (causal + key padding), per batch only (no nh repeat).
    causal = jnp.tril(jnp.ones((S, S), jnp.bool_))
    keep = causal[None, :, :] & (attention_mask[:, None, :] > 0)        # (B, S, S)
    addmask = jnp.where(keep, 0.0, -1e9).astype(jnp.float32)

    weights = [params[name] for name in WEIGHT_NAMES]

    def full_spec(a):
        zeros = (0,) * a.ndim
        return pl.BlockSpec(a.shape, lambda b, _z=zeros: _z)            # weights resident

    grid_spec = pltpu.PrefetchScalarGridSpec(
        num_scalar_prefetch=0,
        grid=(B,),                                                      # parallel over batch
        in_specs=[pl.BlockSpec((S, H), lambda b: (b, 0)),               # activations rows
                  pl.BlockSpec((1, S, S), lambda b: (b, 0, 0))]         # per-batch mask
                 + [full_spec(w) for w in weights],
        out_specs=pl.BlockSpec((S, V), lambda b: (b, 0)),               # lane-dense V=128
    )

    # Advisory cost estimate for XLA scheduling around the fused call.
    flops = B * L * (24 * S * H * H + 4 * S * S * H) + 2 * B * S * H * V
    transcendentals = B * L * (nh * S * S + 4 * S * H) + B * S * (2 * L + 1)
    bytes_accessed = (sum(int(a.size) * a.dtype.itemsize for a in ([x2d, addmask] + weights))
                      + B * S * V * 4)

    kernel = functools.partial(gpt2_forward_kernel, nh, L)
    logits2d = pl.pallas_call(
        kernel,
        out_shape=jax.ShapeDtypeStruct((B * S, V), jnp.float32),
        grid_spec=grid_spec,
        compiler_params=pltpu.CompilerParams(
            dimension_semantics=("parallel",),
            vmem_limit_bytes=32 * 1024 * 1024),
        cost_estimate=pl.CostEstimate(flops=flops,
                                      transcendentals=transcendentals,
                                      bytes_accessed=bytes_accessed),
    )(x2d, addmask, *weights)

    return logits2d.reshape(B, S, V)                                    # wrapper-side unflatten


# ------------------------------ main ------------------------------
if __name__ == "__main__":
    key = jax.random.PRNGKey(0)
    pkey, ikey = jax.random.split(key)

    params = init_params(pkey)

    input_ids = jax.random.randint(ikey, (BATCH, SEQ), 0, VOCAB, dtype=jnp.int32)
    attention_mask = jnp.ones((BATCH, SEQ), jnp.int32).at[1, SEQ - 2:].set(0)  # pad tail of 2nd seq

    logits = jax.jit(gpt_lm_forward)(params, input_ids, attention_mask)
    logits = jax.block_until_ready(logits)

    assert logits.shape == (BATCH, SEQ, VOCAB), logits.shape
    assert bool(jnp.all(jnp.isfinite(logits)))
    print("KERNEL_OK")
</pallas_src>

<mosaic_0001>
module attributes {stable_mosaic.version = 11 : i64} {
  func.func @gpt2_forward_kernel(%arg0: i32, %arg1: memref<8x32xf32, #tpu.memory_space<vmem>>, %arg2: memref<1x8x8xf32, #tpu.memory_space<vmem>>, %arg3: memref<2x1x32xf32, #tpu.memory_space<vmem>>, %arg4: memref<2x1x32xf32, #tpu.memory_space<vmem>>, %arg5: memref<2x2x32x16xbf16, #tpu.memory_space<vmem>>, %arg6: memref<2x2x32x16xbf16, #tpu.memory_space<vmem>>, %arg7: memref<2x2x32x16xbf16, #tpu.memory_space<vmem>>, %arg8: memref<2x2x1x16xf32, #tpu.memory_space<vmem>>, %arg9: memref<2x2x1x16xf32, #tpu.memory_space<vmem>>, %arg10: memref<2x2x1x16xf32, #tpu.memory_space<vmem>>, %arg11: memref<2x2x16x32xbf16, #tpu.memory_space<vmem>>, %arg12: memref<2x1x32xf32, #tpu.memory_space<vmem>>, %arg13: memref<2x1x32xf32, #tpu.memory_space<vmem>>, %arg14: memref<2x1x32xf32, #tpu.memory_space<vmem>>, %arg15: memref<2x32x128xbf16, #tpu.memory_space<vmem>>, %arg16: memref<2x1x128xf32, #tpu.memory_space<vmem>>, %arg17: memref<2x128x32xbf16, #tpu.memory_space<vmem>>, %arg18: memref<2x1x32xf32, #tpu.memory_space<vmem>>, %arg19: memref<1x32xf32, #tpu.memory_space<vmem>>, %arg20: memref<1x32xf32, #tpu.memory_space<vmem>>, %arg21: memref<32x128xbf16, #tpu.memory_space<vmem>>, %arg22: memref<8x128xf32, #tpu.memory_space<vmem>>) attributes {dimension_semantics = [#tpu.dimension_semantics<parallel>], iteration_bounds = array<i64: 2>, scalar_prefetch = 0 : i64, scratch_operands = 0 : i64, tpu.core_type = #tpu.core_type<tc>, window_params = [{transform_indices = @transform_0, window_bounds = array<i64: 8, 32>}, {transform_indices = @transform_1, window_bounds = array<i64: 1, 8, 8>}, {pipeline_mode = #tpu.pipeline_mode<synchronous>, transform_indices = @transform_2, window_bounds = array<i64: 2, 1, 32>}, {pipeline_mode = #tpu.pipeline_mode<synchronous>, transform_indices = @transform_3, window_bounds = array<i64: 2, 1, 32>}, {pipeline_mode = #tpu.pipeline_mode<synchronous>, transform_indices = @transform_4, window_bounds = array<i64: 2, 2, 32, 16>}, {pipeline_mode = #tpu.pipeline_mode<synchronous>, transform_indices = @transform_5, window_bounds = array<i64: 2, 2, 32, 16>}, {pipeline_mode = #tpu.pipeline_mode<synchronous>, transform_indices = @transform_6, window_bounds = array<i64: 2, 2, 32, 16>}, {pipeline_mode = #tpu.pipeline_mode<synchronous>, transform_indices = @transform_7, window_bounds = array<i64: 2, 2, 1, 16>}, {pipeline_mode = #tpu.pipeline_mode<synchronous>, transform_indices = @transform_8, window_bounds = array<i64: 2, 2, 1, 16>}, {pipeline_mode = #tpu.pipeline_mode<synchronous>, transform_indices = @transform_9, window_bounds = array<i64: 2, 2, 1, 16>}, {pipeline_mode = #tpu.pipeline_mode<synchronous>, transform_indices = @transform_10, window_bounds = array<i64: 2, 2, 16, 32>}, {pipeline_mode = #tpu.pipeline_mode<synchronous>, transform_indices = @transform_11, window_bounds = array<i64: 2, 1, 32>}, {pipeline_mode = #tpu.pipeline_mode<synchronous>, transform_indices = @transform_12, window_bounds = array<i64: 2, 1, 32>}, {pipeline_mode = #tpu.pipeline_mode<synchronous>, transform_indices = @transform_13, window_bounds = array<i64: 2, 1, 32>}, {pipeline_mode = #tpu.pipeline_mode<synchronous>, transform_indices = @transform_14, window_bounds = array<i64: 2, 32, 128>}, {pipeline_mode = #tpu.pipeline_mode<synchronous>, transform_indices = @transform_15, window_bounds = array<i64: 2, 1, 128>}, {pipeline_mode = #tpu.pipeline_mode<synchronous>, transform_indices = @transform_16, window_bounds = array<i64: 2, 128, 32>}, {pipeline_mode = #tpu.pipeline_mode<synchronous>, transform_indices = @transform_17, window_bounds = array<i64: 2, 1, 32>}, {pipeline_mode = #tpu.pipeline_mode<synchronous>, transform_indices = @transform_18, window_bounds = array<i64: 1, 32>}, {pipeline_mode = #tpu.pipeline_mode<synchronous>, transform_indices = @transform_19, window_bounds = array<i64: 1, 32>}, {pipeline_mode = #tpu.pipeline_mode<synchronous>, transform_indices = @transform_20, window_bounds = array<i64: 32, 128>}, {transform_indices = @transform_21, window_bounds = array<i64: 8, 128>}]} {
    %c0 = arith.constant 0 : index
    %c0_0 = arith.constant 0 : index
    %0 = vector.load %arg1[%c0, %c0_0] : memref<8x32xf32, #tpu.memory_space<vmem>>, vector<8x32xf32>
    %c0_1 = arith.constant 0 : index
    %c0_2 = arith.constant 0 : index
    %c0_3 = arith.constant 0 : index
    %1 = vector.load %arg2[%c0_1, %c0_2, %c0_3] : memref<1x8x8xf32, #tpu.memory_space<vmem>>, vector<1x8x8xf32>
    %2 = vector.shape_cast %1 : vector<1x8x8xf32> to vector<8x8xf32>
    %c0_4 = arith.constant 0 : index
    %c0_5 = arith.constant 0 : index
    %c0_6 = arith.constant 0 : index
    %3 = vector.load %arg3[%c0_4, %c0_5, %c0_6] : memref<2x1x32xf32, #tpu.memory_space<vmem>>, vector<1x1x32xf32>
    %4 = vector.shape_cast %3 : vector<1x1x32xf32> to vector<1x32xf32>
    %c0_7 = arith.constant 0 : index
    %c0_8 = arith.constant 0 : index
    %c0_9 = arith.constant 0 : index
    %5 = vector.load %arg4[%c0_7, %c0_8, %c0_9] : memref<2x1x32xf32, #tpu.memory_space<vmem>>, vector<1x1x32xf32>
    %6 = vector.shape_cast %5 : vector<1x1x32xf32> to vector<1x32xf32>
    %cst = arith.constant dense<0.000000e+00> : vector<8xf32>
    %7 = vector.multi_reduction <add>, %0, %cst [1] : vector<8x32xf32> to vector<8xf32>
    %8 = vector.shape_cast %7 : vector<8xf32> to vector<8x1xf32>
    %cst_10 = arith.constant 3.200000e+01 : f32
    %9 = vector.broadcast %cst_10 : f32 to vector<8x1xf32>
    %10 = arith.divf %8, %9 : vector<8x1xf32>
    %11 = vector.broadcast %10 : vector<8x1xf32> to vector<8x32xf32>
    %12 = arith.subf %0, %11 : vector<8x32xf32>
    %13 = arith.mulf %12, %12 : vector<8x32xf32>
    %cst_11 = arith.constant dense<0.000000e+00> : vector<8xf32>
    %14 = vector.multi_reduction <add>, %13, %cst_11 [1] : vector<8x32xf32> to vector<8xf32>
    %15 = vector.shape_cast %14 : vector<8xf32> to vector<8x1xf32>
    %cst_12 = arith.constant 3.200000e+01 : f32
    %16 = vector.broadcast %cst_12 : f32 to vector<8x1xf32>
    %17 = arith.divf %15, %16 : vector<8x1xf32>
    %18 = vector.broadcast %10 : vector<8x1xf32> to vector<8x32xf32>
    %19 = arith.subf %0, %18 : vector<8x32xf32>
    %cst_13 = arith.constant 9.99999974E-6 : f32
    %20 = vector.broadcast %cst_13 : f32 to vector<8x1xf32>
    %21 = arith.addf %17, %20 : vector<8x1xf32>
    %22 = math.rsqrt %21 : vector<8x1xf32>
    %23 = vector.broadcast %22 : vector<8x1xf32> to vector<8x32xf32>
    %24 = arith.mulf %19, %23 : vector<8x32xf32>
    %25 = vector.broadcast %4 : vector<1x32xf32> to vector<8x32xf32>
    %26 = arith.mulf %24, %25 : vector<8x32xf32>
    %27 = vector.broadcast %6 : vector<1x32xf32> to vector<8x32xf32>
    %28 = arith.addf %26, %27 : vector<8x32xf32>
    %29 = arith.truncf %28 : vector<8x32xf32> to vector<8x32xbf16>
    %30 = vector.shape_cast %29 : vector<8x32xbf16> to vector<1x8x32xbf16>
    %31 = vector.broadcast %30 : vector<1x8x32xbf16> to vector<2x8x32xbf16>
    %c0_14 = arith.constant 0 : index
    %c0_15 = arith.constant 0 : index
    %c0_16 = arith.constant 0 : index
    %c0_17 = arith.constant 0 : index
    %32 = vector.load %arg5[%c0_14, %c0_15, %c0_16, %c0_17] : memref<2x2x32x16xbf16, #tpu.memory_space<vmem>>, vector<1x2x32x16xbf16>
    %33 = vector.shape_cast %32 : vector<1x2x32x16xbf16> to vector<2x32x16xbf16>
    "tpu.trace_start"() <{level = 10 : i32, message = "nsh,nhd->nsd"}> : () -> ()
    %cst_18 = arith.constant dense<0.000000e+00> : vector<2x8x16xf32>
    %34 = tpu.matmul %31, %33, %cst_18 {dimension_numbers = #tpu.dot_dimension_numbers<[2], [1], [1], [2], [0, 0, 0, 1, 1, 2], [0], [0]>} : vector<2x8x32xbf16>, vector<2x32x16xbf16>, vector<2x8x16xf32> -> vector<2x8x16xf32>
    "tpu.trace_stop"() : () -> ()
    %c0_19 = arith.constant 0 : index
    %c0_20 = arith.constant 0 : index
    %c0_21 = arith.constant 0 : index
    %c0_22 = arith.constant 0 : index
    %35 = vector.load %arg8[%c0_19, %c0_20, %c0_21, %c0_22] : memref<2x2x1x16xf32, #tpu.memory_space<vmem>>, vector<1x2x1x16xf32>
    %36 = vector.shape_cast %35 : vector<1x2x1x16xf32> to vector<2x1x16xf32>
    %37 = vector.broadcast %36 : vector<2x1x16xf32> to vector<2x8x16xf32>
    %38 = arith.addf %34, %37 : vector<2x8x16xf32>
    %c0_23 = arith.constant 0 : index
    %c0_24 = arith.constant 0 : index
    %c0_25 = arith.constant 0 : index
    %c0_26 = arith.constant 0 : index
    %39 = vector.load %arg6[%c0_23, %c0_24, %c0_25, %c0_26] : memref<2x2x32x16xbf16, #tpu.memory_space<vmem>>, vector<1x2x32x16xbf16>
    %40 = vector.shape_cast %39 : vector<1x2x32x16xbf16> to vector<2x32x16xbf16>
    "tpu.trace_start"() <{level = 10 : i32, message = "nsh,nhd->nsd"}> : () -> ()
    %cst_27 = arith.constant dense<0.000000e+00> : vector<2x8x16xf32>
    %41 = tpu.matmul %31, %40, %cst_27 {dimension_numbers = #tpu.dot_dimension_numbers<[2], [1], [1], [2], [0, 0, 0, 1, 1, 2], [0], [0]>} : vector<2x8x32xbf16>, vector<2x32x16xbf16>, vector<2x8x16xf32> -> vector<2x8x16xf32>
    "tpu.trace_stop"() : () -> ()
    %c0_28 = arith.constant 0 : index
    %c0_29 = arith.constant 0 : index
    %c0_30 = arith.constant 0 : index
    %c0_31 = arith.constant 0 : index
    %42 = vector.load %arg9[%c0_28, %c0_29, %c0_30, %c0_31] : memref<2x2x1x16xf32, #tpu.memory_space<vmem>>, vector<1x2x1x16xf32>
    %43 = vector.shape_cast %42 : vector<1x2x1x16xf32> to vector<2x1x16xf32>
    %44 = vector.broadcast %43 : vector<2x1x16xf32> to vector<2x8x16xf32>
    %45 = arith.addf %41, %44 : vector<2x8x16xf32>
    %c0_32 = arith.constant 0 : index
    %c0_33 = arith.constant 0 : index
    %c0_34 = arith.constant 0 : index
    %c0_35 = arith.constant 0 : index
    %46 = vector.load %arg7[%c0_32, %c0_33, %c0_34, %c0_35] : memref<2x2x32x16xbf16, #tpu.memory_space<vmem>>, vector<1x2x32x16xbf16>
    %47 = vector.shape_cast %46 : vector<1x2x32x16xbf16> to vector<2x32x16xbf16>
    "tpu.trace_start"() <{level = 10 : i32, message = "nsh,nhd->nsd"}> : () -> ()
    %cst_36 = arith.constant dense<0.000000e+00> : vector<2x8x16xf32>
    %48 = tpu.matmul %31, %47, %cst_36 {dimension_numbers = #tpu.dot_dimension_numbers<[2], [1], [1], [2], [0, 0, 0, 1, 1, 2], [0], [0]>} : vector<2x8x32xbf16>, vector<2x32x16xbf16>, vector<2x8x16xf32> -> vector<2x8x16xf32>
    "tpu.trace_stop"() : () -> ()
    %c0_37 = arith.constant 0 : index
    %c0_38 = arith.constant 0 : index
    %c0_39 = arith.constant 0 : index
    %c0_40 = arith.constant 0 : index
    %49 = vector.load %arg10[%c0_37, %c0_38, %c0_39, %c0_40] : memref<2x2x1x16xf32, #tpu.memory_space<vmem>>, vector<1x2x1x16xf32>
    %50 = vector.shape_cast %49 : vector<1x2x1x16xf32> to vector<2x1x16xf32>
    %51 = vector.broadcast %50 : vector<2x1x16xf32> to vector<2x8x16xf32>
    %52 = arith.addf %48, %51 : vector<2x8x16xf32>
    %53 = arith.truncf %38 : vector<2x8x16xf32> to vector<2x8x16xbf16>
    %54 = arith.truncf %45 : vector<2x8x16xf32> to vector<2x8x16xbf16>
    "tpu.trace_start"() <{level = 10 : i32, message = "nqd,nkd->nqk"}> : () -> ()
    %cst_41 = arith.constant dense<0.000000e+00> : vector<2x8x8xf32>
    %55 = tpu.matmul %53, %54, %cst_41 {dimension_numbers = #tpu.dot_dimension_numbers<[2], [2], [1], [1], [0, 0, 0, 1, 1, 1], [0], [0]>} : vector<2x8x16xbf16>, vector<2x8x16xbf16>, vector<2x8x8xf32> -> vector<2x8x8xf32>
    "tpu.trace_stop"() : () -> ()
    %56 = vector.shape_cast %2 : vector<8x8xf32> to vector<1x8x8xf32>
    %57 = vector.broadcast %56 : vector<1x8x8xf32> to vector<2x8x8xf32>
    %58 = arith.addf %55, %57 : vector<2x8x8xf32>
    %cst_42 = arith.constant dense<0xFF800000> : vector<2x8xf32>
    %59 = vector.multi_reduction <maximumf>, %58, %cst_42 [2] : vector<2x8x8xf32> to vector<2x8xf32>
    %60 = vector.shape_cast %59 : vector<2x8xf32> to vector<2x8x1xf32>
    %61 = vector.broadcast %60 : vector<2x8x1xf32> to vector<2x8x8xf32>
    %62 = arith.subf %58, %61 : vector<2x8x8xf32>
    %63 = math.exp %62 : vector<2x8x8xf32>
    %cst_43 = arith.constant dense<0.000000e+00> : vector<2x8xf32>
    %64 = vector.multi_reduction <add>, %63, %cst_43 [2] : vector<2x8x8xf32> to vector<2x8xf32>
    %65 = vector.shape_cast %64 : vector<2x8xf32> to vector<2x8x1xf32>
    %66 = tpu.reciprocal %65 {approx = true} : vector<2x8x1xf32> -> vector<2x8x1xf32>
    %67 = vector.broadcast %66 : vector<2x8x1xf32> to vector<2x8x8xf32>
    %68 = arith.mulf %63, %67 : vector<2x8x8xf32>
    %69 = arith.truncf %68 : vector<2x8x8xf32> to vector<2x8x8xbf16>
    %70 = arith.truncf %52 : vector<2x8x16xf32> to vector<2x8x16xbf16>
    "tpu.trace_start"() <{level = 10 : i32, message = "nqk,nkd->nqd"}> : () -> ()
    %cst_44 = arith.constant dense<0.000000e+00> : vector<2x8x16xf32>
    %71 = tpu.matmul %69, %70, %cst_44 {dimension_numbers = #tpu.dot_dimension_numbers<[2], [1], [1], [2], [0, 0, 0, 1, 1, 2], [0], [0]>} : vector<2x8x8xbf16>, vector<2x8x16xbf16>, vector<2x8x16xf32> -> vector<2x8x16xf32>
    "tpu.trace_stop"() : () -> ()
    %72 = arith.truncf %71 : vector<2x8x16xf32> to vector<2x8x16xbf16>
    %c0_45 = arith.constant 0 : index
    %c0_46 = arith.constant 0 : index
    %c0_47 = arith.constant 0 : index
    %c0_48 = arith.constant 0 : index
    %73 = vector.load %arg11[%c0_45, %c0_46, %c0_47, %c0_48] : memref<2x2x16x32xbf16, #tpu.memory_space<vmem>>, vector<1x2x16x32xbf16>
    %74 = vector.shape_cast %73 : vector<1x2x16x32xbf16> to vector<2x16x32xbf16>
    "tpu.trace_start"() <{level = 10 : i32, message = "nsd,ndh->nsh"}> : () -> ()
    %cst_49 = arith.constant dense<0.000000e+00> : vector<2x8x32xf32>
    %75 = tpu.matmul %72, %74, %cst_49 {dimension_numbers = #tpu.dot_dimension_numbers<[2], [1], [1], [2], [0, 0, 0, 1, 1, 2], [0], [0]>} : vector<2x8x16xbf16>, vector<2x16x32xbf16>, vector<2x8x32xf32> -> vector<2x8x32xf32>
    "tpu.trace_stop"() : () -> ()
    %cst_50 = arith.constant dense<0.000000e+00> : vector<8x32xf32>
    %76 = vector.multi_reduction <add>, %75, %cst_50 [0] : vector<2x8x32xf32> to vector<8x32xf32>
    %c0_51 = arith.constant 0 : index
    %c0_52 = arith.constant 0 : index
    %c0_53 = arith.constant 0 : index
    %77 = vector.load %arg12[%c0_51, %c0_52, %c0_53] : memref<2x1x32xf32, #tpu.memory_space<vmem>>, vector<1x1x32xf32>
    %78 = vector.shape_cast %77 : vector<1x1x32xf32> to vector<1x32xf32>
    %79 = vector.broadcast %78 : vector<1x32xf32> to vector<8x32xf32>
    %80 = arith.addf %76, %79 : vector<8x32xf32>
    %81 = arith.addf %0, %80 : vector<8x32xf32>
    %c0_54 = arith.constant 0 : index
    %c0_55 = arith.constant 0 : index
    %c0_56 = arith.constant 0 : index
    %82 = vector.load %arg13[%c0_54, %c0_55, %c0_56] : memref<2x1x32xf32, #tpu.memory_space<vmem>>, vector<1x1x32xf32>
    %83 = vector.shape_cast %82 : vector<1x1x32xf32> to vector<1x32xf32>
    %c0_57 = arith.constant 0 : index
    %c0_58 = arith.constant 0 : index
    %c0_59 = arith.constant 0 : index
    %84 = vector.load %arg14[%c0_57, %c0_58, %c0_59] : memref<2x1x32xf32, #tpu.memory_space<vmem>>, vector<1x1x32xf32>
    %85 = vector.shape_cast %84 : vector<1x1x32xf32> to vector<1x32xf32>
    %cst_60 = arith.constant dense<0.000000e+00> : vector<8xf32>
    %86 = vector.multi_reduction <add>, %81, %cst_60 [1] : vector<8x32xf32> to vector<8xf32>
    %87 = vector.shape_cast %86 : vector<8xf32> to vector<8x1xf32>
    %cst_61 = arith.constant 3.200000e+01 : f32
    %88 = vector.broadcast %cst_61 : f32 to vector<8x1xf32>
    %89 = arith.divf %87, %88 : vector<8x1xf32>
    %90 = vector.broadcast %89 : vector<8x1xf32> to vector<8x32xf32>
    %91 = arith.subf %81, %90 : vector<8x32xf32>
    %92 = arith.mulf %91, %91 : vector<8x32xf32>
    %cst_62 = arith.constant dense<0.000000e+00> : vector<8xf32>
    %93 = vector.multi_reduction <add>, %92, %cst_62 [1] : vector<8x32xf32> to vector<8xf32>
    %94 = vector.shape_cast %93 : vector<8xf32> to vector<8x1xf32>
    %cst_63 = arith.constant 3.200000e+01 : f32
    %95 = vector.broadcast %cst_63 : f32 to vector<8x1xf32>
    %96 = arith.divf %94, %95 : vector<8x1xf32>
    %97 = vector.broadcast %89 : vector<8x1xf32> to vector<8x32xf32>
    %98 = arith.subf %81, %97 : vector<8x32xf32>
    %cst_64 = arith.constant 9.99999974E-6 : f32
    %99 = vector.broadcast %cst_64 : f32 to vector<8x1xf32>
    %100 = arith.addf %96, %99 : vector<8x1xf32>
    %101 = math.rsqrt %100 : vector<8x1xf32>
    %102 = vector.broadcast %101 : vector<8x1xf32> to vector<8x32xf32>
    %103 = arith.mulf %98, %102 : vector<8x32xf32>
    %104 = vector.broadcast %83 : vector<1x32xf32> to vector<8x32xf32>
    %105 = arith.mulf %103, %104 : vector<8x32xf32>
    %106 = vector.broadcast %85 : vector<1x32xf32> to vector<8x32xf32>
    %107 = arith.addf %105, %106 : vector<8x32xf32>
    %108 = arith.truncf %107 : vector<8x32xf32> to vector<8x32xbf16>
    %c0_65 = arith.constant 0 : index
    %c0_66 = arith.constant 0 : index
    %c0_67 = arith.constant 0 : index
    %109 = vector.load %arg15[%c0_65, %c0_66, %c0_67] : memref<2x32x128xbf16, #tpu.memory_space<vmem>>, vector<1x32x128xbf16>
    %110 = vector.shape_cast %109 : vector<1x32x128xbf16> to vector<32x128xbf16>
    %cst_68 = arith.constant dense<0.000000e+00> : vector<8x128xf32>
    %111 = tpu.matmul %108, %110, %cst_68 {dimension_numbers = #tpu.dot_dimension_numbers<[1], [0], [0], [1], [0, 0, 1, 1], [], []>} : vector<8x32xbf16>, vector<32x128xbf16>, vector<8x128xf32> -> vector<8x128xf32>
    %c0_69 = arith.constant 0 : index
    %c0_70 = arith.constant 0 : index
    %c0_71 = arith.constant 0 : index
    %112 = vector.load %arg16[%c0_69, %c0_70, %c0_71] : memref<2x1x128xf32, #tpu.memory_space<vmem>>, vector<1x1x128xf32>
    %113 = vector.shape_cast %112 : vector<1x1x128xf32> to vector<1x128xf32>
    %114 = vector.broadcast %113 : vector<1x128xf32> to vector<8x128xf32>
    %115 = arith.addf %111, %114 : vector<8x128xf32>
    %cst_72 = arith.constant 5.000000e-01 : f32
    %116 = vector.broadcast %cst_72 : f32 to vector<8x128xf32>
    %117 = arith.mulf %116, %115 : vector<8x128xf32>
    %cst_73 = arith.constant 4.471500e-02 : f32
    %118 = vector.broadcast %cst_73 : f32 to vector<8x128xf32>
    %119 = arith.mulf %118, %115 : vector<8x128xf32>
    %120 = arith.mulf %119, %115 : vector<8x128xf32>
    %121 = arith.mulf %120, %115 : vector<8x128xf32>
    %122 = arith.addf %115, %121 : vector<8x128xf32>
    %cst_74 = arith.constant 0.797884583 : f32
    %123 = vector.broadcast %cst_74 : f32 to vector<8x128xf32>
    %124 = arith.mulf %123, %122 : vector<8x128xf32>
    %125 = math.tanh %124 : vector<8x128xf32>
    %cst_75 = arith.constant 1.000000e+00 : f32
    %126 = vector.broadcast %cst_75 : f32 to vector<8x128xf32>
    %127 = arith.addf %126, %125 : vector<8x128xf32>
    %128 = arith.mulf %117, %127 : vector<8x128xf32>
    %129 = arith.truncf %128 : vector<8x128xf32> to vector<8x128xbf16>
    %c0_76 = arith.constant 0 : index
    %c0_77 = arith.constant 0 : index
    %c0_78 = arith.constant 0 : index
    %130 = vector.load %arg17[%c0_76, %c0_77, %c0_78] : memref<2x128x32xbf16, #tpu.memory_space<vmem>>, vector<1x128x32xbf16>
    %131 = vector.shape_cast %130 : vector<1x128x32xbf16> to vector<128x32xbf16>
    %cst_79 = arith.constant dense<0.000000e+00> : vector<8x32xf32>
    %132 = tpu.matmul %129, %131, %cst_79 {dimension_numbers = #tpu.dot_dimension_numbers<[1], [0], [0], [1], [0, 0, 1, 1], [], []>} : vector<8x128xbf16>, vector<128x32xbf16>, vector<8x32xf32> -> vector<8x32xf32>
    %c0_80 = arith.constant 0 : index
    %c0_81 = arith.constant 0 : index
    %c0_82 = arith.constant 0 : index
    %133 = vector.load %arg18[%c0_80, %c0_81, %c0_82] : memref<2x1x32xf32, #tpu.memory_space<vmem>>, vector<1x1x32xf32>
    %134 = vector.shape_cast %133 : vector<1x1x32xf32> to vector<1x32xf32>
    %135 = vector.broadcast %134 : vector<1x32xf32> to vector<8x32xf32>
    %136 = arith.addf %132, %135 : vector<8x32xf32>
    %137 = arith.addf %81, %136 : vector<8x32xf32>
    %c1 = arith.constant 1 : index
    %c0_83 = arith.constant 0 : index
    %c0_84 = arith.constant 0 : index
    %138 = vector.load %arg3[%c1, %c0_83, %c0_84] : memref<2x1x32xf32, #tpu.memory_space<vmem>>, vector<1x1x32xf32>
    %139 = vector.shape_cast %138 : vector<1x1x32xf32> to vector<1x32xf32>
    %c1_85 = arith.constant 1 : index
    %c0_86 = arith.constant 0 : index
    %c0_87 = arith.constant 0 : index
    %140 = vector.load %arg4[%c1_85, %c0_86, %c0_87] : memref<2x1x32xf32, #tpu.memory_space<vmem>>, vector<1x1x32xf32>
    %141 = vector.shape_cast %140 : vector<1x1x32xf32> to vector<1x32xf32>
    %cst_88 = arith.constant dense<0.000000e+00> : vector<8xf32>
    %142 = vector.multi_reduction <add>, %137, %cst_88 [1] : vector<8x32xf32> to vector<8xf32>
    %143 = vector.shape_cast %142 : vector<8xf32> to vector<8x1xf32>
    %cst_89 = arith.constant 3.200000e+01 : f32
    %144 = vector.broadcast %cst_89 : f32 to vector<8x1xf32>
    %145 = arith.divf %143, %144 : vector<8x1xf32>
    %146 = vector.broadcast %145 : vector<8x1xf32> to vector<8x32xf32>
    %147 = arith.subf %137, %146 : vector<8x32xf32>
    %148 = arith.mulf %147, %147 : vector<8x32xf32>
    %cst_90 = arith.constant dense<0.000000e+00> : vector<8xf32>
    %149 = vector.multi_reduction <add>, %148, %cst_90 [1] : vector<8x32xf32> to vector<8xf32>
    %150 = vector.shape_cast %149 : vector<8xf32> to vector<8x1xf32>
    %cst_91 = arith.constant 3.200000e+01 : f32
    %151 = vector.broadcast %cst_91 : f32 to vector<8x1xf32>
    %152 = arith.divf %150, %151 : vector<8x1xf32>
    %153 = vector.broadcast %145 : vector<8x1xf32> to vector<8x32xf32>
    %154 = arith.subf %137, %153 : vector<8x32xf32>
    %cst_92 = arith.constant 9.99999974E-6 : f32
    %155 = vector.broadcast %cst_92 : f32 to vector<8x1xf32>
    %156 = arith.addf %152, %155 : vector<8x1xf32>
    %157 = math.rsqrt %156 : vector<8x1xf32>
    %158 = vector.broadcast %157 : vector<8x1xf32> to vector<8x32xf32>
    %159 = arith.mulf %154, %158 : vector<8x32xf32>
    %160 = vector.broadcast %139 : vector<1x32xf32> to vector<8x32xf32>
    %161 = arith.mulf %159, %160 : vector<8x32xf32>
    %162 = vector.broadcast %141 : vector<1x32xf32> to vector<8x32xf32>
    %163 = arith.addf %161, %162 : vector<8x32xf32>
    %164 = arith.truncf %163 : vector<8x32xf32> to vector<8x32xbf16>
    %165 = vector.shape_cast %164 : vector<8x32xbf16> to vector<1x8x32xbf16>
    %166 = vector.broadcast %165 : vector<1x8x32xbf16> to vector<2x8x32xbf16>
    %c1_93 = arith.constant 1 : index
    %c0_94 = arith.constant 0 : index
    %c0_95 = arith.constant 0 : index
    %c0_96 = arith.constant 0 : index
    %167 = vector.load %arg5[%c1_93, %c0_94, %c0_95, %c0_96] : memref<2x2x32x16xbf16, #tpu.memory_space<vmem>>, vector<1x2x32x16xbf16>
    %168 = vector.shape_cast %167 : vector<1x2x32x16xbf16> to vector<2x32x16xbf16>
    "tpu.trace_start"() <{level = 10 : i32, message = "nsh,nhd->nsd"}> : () -> ()
    %cst_97 = arith.constant dense<0.000000e+00> : vector<2x8x16xf32>
    %169 = tpu.matmul %166, %168, %cst_97 {dimension_numbers = #tpu.dot_dimension_numbers<[2], [1], [1], [2], [0, 0, 0, 1, 1, 2], [0], [0]>} : vector<2x8x32xbf16>, vector<2x32x16xbf16>, vector<2x8x16xf32> -> vector<2x8x16xf32>
    "tpu.trace_stop"() : () -> ()
    %c1_98 = arith.constant 1 : index
    %c0_99 = arith.constant 0 : index
    %c0_100 = arith.constant 0 : index
    %c0_101 = arith.constant 0 : index
    %170 = vector.load %arg8[%c1_98, %c0_99, %c0_100, %c0_101] : memref<2x2x1x16xf32, #tpu.memory_space<vmem>>, vector<1x2x1x16xf32>
    %171 = vector.shape_cast %170 : vector<1x2x1x16xf32> to vector<2x1x16xf32>
    %172 = vector.broadcast %171 : vector<2x1x16xf32> to vector<2x8x16xf32>
    %173 = arith.addf %169, %172 : vector<2x8x16xf32>
    %c1_102 = arith.constant 1 : index
    %c0_103 = arith.constant 0 : index
    %c0_104 = arith.constant 0 : index
    %c0_105 = arith.constant 0 : index
    %174 = vector.load %arg6[%c1_102, %c0_103, %c0_104, %c0_105] : memref<2x2x32x16xbf16, #tpu.memory_space<vmem>>, vector<1x2x32x16xbf16>
    %175 = vector.shape_cast %174 : vector<1x2x32x16xbf16> to vector<2x32x16xbf16>
    "tpu.trace_start"() <{level = 10 : i32, message = "nsh,nhd->nsd"}> : () -> ()
    %cst_106 = arith.constant dense<0.000000e+00> : vector<2x8x16xf32>
    %176 = tpu.matmul %166, %175, %cst_106 {dimension_numbers = #tpu.dot_dimension_numbers<[2], [1], [1], [2], [0, 0, 0, 1, 1, 2], [0], [0]>} : vector<2x8x32xbf16>, vector<2x32x16xbf16>, vector<2x8x16xf32> -> vector<2x8x16xf32>
    "tpu.trace_stop"() : () -> ()
    %c1_107 = arith.constant 1 : index
    %c0_108 = arith.constant 0 : index
    %c0_109 = arith.constant 0 : index
    %c0_110 = arith.constant 0 : index
    %177 = vector.load %arg9[%c1_107, %c0_108, %c0_109, %c0_110] : memref<2x2x1x16xf32, #tpu.memory_space<vmem>>, vector<1x2x1x16xf32>
    %178 = vector.shape_cast %177 : vector<1x2x1x16xf32> to vector<2x1x16xf32>
    %179 = vector.broadcast %178 : vector<2x1x16xf32> to vector<2x8x16xf32>
    %180 = arith.addf %176, %179 : vector<2x8x16xf32>
    %c1_111 = arith.constant 1 : index
    %c0_112 = arith.constant 0 : index
    %c0_113 = arith.constant 0 : index
    %c0_114 = arith.constant 0 : index
    %181 = vector.load %arg7[%c1_111, %c0_112, %c0_113, %c0_114] : memref<2x2x32x16xbf16, #tpu.memory_space<vmem>>, vector<1x2x32x16xbf16>
    %182 = vector.shape_cast %181 : vector<1x2x32x16xbf16> to vector<2x32x16xbf16>
    "tpu.trace_start"() <{level = 10 : i32, message = "nsh,nhd->nsd"}> : () -> ()
    %cst_115 = arith.constant dense<0.000000e+00> : vector<2x8x16xf32>
    %183 = tpu.matmul %166, %182, %cst_115 {dimension_numbers = #tpu.dot_dimension_numbers<[2], [1], [1], [2], [0, 0, 0, 1, 1, 2], [0], [0]>} : vector<2x8x32xbf16>, vector<2x32x16xbf16>, vector<2x8x16xf32> -> vector<2x8x16xf32>
    "tpu.trace_stop"() : () -> ()
    %c1_116 = arith.constant 1 : index
    %c0_117 = arith.constant 0 : index
    %c0_118 = arith.constant 0 : index
    %c0_119 = arith.constant 0 : index
    %184 = vector.load %arg10[%c1_116, %c0_117, %c0_118, %c0_119] : memref<2x2x1x16xf32, #tpu.memory_space<vmem>>, vector<1x2x1x16xf32>
    %185 = vector.shape_cast %184 : vector<1x2x1x16xf32> to vector<2x1x16xf32>
    %186 = vector.broadcast %185 : vector<2x1x16xf32> to vector<2x8x16xf32>
    %187 = arith.addf %183, %186 : vector<2x8x16xf32>
    %188 = arith.truncf %173 : vector<2x8x16xf32> to vector<2x8x16xbf16>
    %189 = arith.truncf %180 : vector<2x8x16xf32> to vector<2x8x16xbf16>
    "tpu.trace_start"() <{level = 10 : i32, message = "nqd,nkd->nqk"}> : () -> ()
    %cst_120 = arith.constant dense<0.000000e+00> : vector<2x8x8xf32>
    %190 = tpu.matmul %188, %189, %cst_120 {dimension_numbers = #tpu.dot_dimension_numbers<[2], [2], [1], [1], [0, 0, 0, 1, 1, 1], [0], [0]>} : vector<2x8x16xbf16>, vector<2x8x16xbf16>, vector<2x8x8xf32> -> vector<2x8x8xf32>
    "tpu.trace_stop"() : () -> ()
    %191 = vector.shape_cast %2 : vector<8x8xf32> to vector<1x8x8xf32>
    %192 = vector.broadcast %191 : vector<1x8x8xf32> to vector<2x8x8xf32>
    %193 = arith.addf %190, %192 : vector<2x8x8xf32>
    %cst_121 = arith.constant dense<0xFF800000> : vector<2x8xf32>
    %194 = vector.multi_reduction <maximumf>, %193, %cst_121 [2] : vector<2x8x8xf32> to vector<2x8xf32>
    %195 = vector.shape_cast %194 : vector<2x8xf32> to vector<2x8x1xf32>
    %196 = vector.broadcast %195 : vector<2x8x1xf32> to vector<2x8x8xf32>
    %197 = arith.subf %193, %196 : vector<2x8x8xf32>
    %198 = math.exp %197 : vector<2x8x8xf32>
    %cst_122 = arith.constant dense<0.000000e+00> : vector<2x8xf32>
    %199 = vector.multi_reduction <add>, %198, %cst_122 [2] : vector<2x8x8xf32> to vector<2x8xf32>
    %200 = vector.shape_cast %199 : vector<2x8xf32> to vector<2x8x1xf32>
    %201 = tpu.reciprocal %200 {approx = true} : vector<2x8x1xf32> -> vector<2x8x1xf32>
    %202 = vector.broadcast %201 : vector<2x8x1xf32> to vector<2x8x8xf32>
    %203 = arith.mulf %198, %202 : vector<2x8x8xf32>
    %204 = arith.truncf %203 : vector<2x8x8xf32> to vector<2x8x8xbf16>
    %205 = arith.truncf %187 : vector<2x8x16xf32> to vector<2x8x16xbf16>
    "tpu.trace_start"() <{level = 10 : i32, message = "nqk,nkd->nqd"}> : () -> ()
    %cst_123 = arith.constant dense<0.000000e+00> : vector<2x8x16xf32>
    %206 = tpu.matmul %204, %205, %cst_123 {dimension_numbers = #tpu.dot_dimension_numbers<[2], [1], [1], [2], [0, 0, 0, 1, 1, 2], [0], [0]>} : vector<2x8x8xbf16>, vector<2x8x16xbf16>, vector<2x8x16xf32> -> vector<2x8x16xf32>
    "tpu.trace_stop"() : () -> ()
    %207 = arith.truncf %206 : vector<2x8x16xf32> to vector<2x8x16xbf16>
    %c1_124 = arith.constant 1 : index
    %c0_125 = arith.constant 0 : index
    %c0_126 = arith.constant 0 : index
    %c0_127 = arith.constant 0 : index
    %208 = vector.load %arg11[%c1_124, %c0_125, %c0_126, %c0_127] : memref<2x2x16x32xbf16, #tpu.memory_space<vmem>>, vector<1x2x16x32xbf16>
    %209 = vector.shape_cast %208 : vector<1x2x16x32xbf16> to vector<2x16x32xbf16>
    "tpu.trace_start"() <{level = 10 : i32, message = "nsd,ndh->nsh"}> : () -> ()
    %cst_128 = arith.constant dense<0.000000e+00> : vector<2x8x32xf32>
    %210 = tpu.matmul %207, %209, %cst_128 {dimension_numbers = #tpu.dot_dimension_numbers<[2], [1], [1], [2], [0, 0, 0, 1, 1, 2], [0], [0]>} : vector<2x8x16xbf16>, vector<2x16x32xbf16>, vector<2x8x32xf32> -> vector<2x8x32xf32>
    "tpu.trace_stop"() : () -> ()
    %cst_129 = arith.constant dense<0.000000e+00> : vector<8x32xf32>
    %211 = vector.multi_reduction <add>, %210, %cst_129 [0] : vector<2x8x32xf32> to vector<8x32xf32>
    %c1_130 = arith.constant 1 : index
    %c0_131 = arith.constant 0 : index
    %c0_132 = arith.constant 0 : index
    %212 = vector.load %arg12[%c1_130, %c0_131, %c0_132] : memref<2x1x32xf32, #tpu.memory_space<vmem>>, vector<1x1x32xf32>
    %213 = vector.shape_cast %212 : vector<1x1x32xf32> to vector<1x32xf32>
    %214 = vector.broadcast %213 : vector<1x32xf32> to vector<8x32xf32>
    %215 = arith.addf %211, %214 : vector<8x32xf32>
    %216 = arith.addf %137, %215 : vector<8x32xf32>
    %c1_133 = arith.constant 1 : index
    %c0_134 = arith.constant 0 : index
    %c0_135 = arith.constant 0 : index
    %217 = vector.load %arg13[%c1_133, %c0_134, %c0_135] : memref<2x1x32xf32, #tpu.memory_space<vmem>>, vector<1x1x32xf32>
    %218 = vector.shape_cast %217 : vector<1x1x32xf32> to vector<1x32xf32>
    %c1_136 = arith.constant 1 : index
    %c0_137 = arith.constant 0 : index
    %c0_138 = arith.constant 0 : index
    %219 = vector.load %arg14[%c1_136, %c0_137, %c0_138] : memref<2x1x32xf32, #tpu.memory_space<vmem>>, vector<1x1x32xf32>
    %220 = vector.shape_cast %219 : vector<1x1x32xf32> to vector<1x32xf32>
    %cst_139 = arith.constant dense<0.000000e+00> : vector<8xf32>
    %221 = vector.multi_reduction <add>, %216, %cst_139 [1] : vector<8x32xf32> to vector<8xf32>
    %222 = vector.shape_cast %221 : vector<8xf32> to vector<8x1xf32>
    %cst_140 = arith.constant 3.200000e+01 : f32
    %223 = vector.broadcast %cst_140 : f32 to vector<8x1xf32>
    %224 = arith.divf %222, %223 : vector<8x1xf32>
    %225 = vector.broadcast %224 : vector<8x1xf32> to vector<8x32xf32>
    %226 = arith.subf %216, %225 : vector<8x32xf32>
    %227 = arith.mulf %226, %226 : vector<8x32xf32>
    %cst_141 = arith.constant dense<0.000000e+00> : vector<8xf32>
    %228 = vector.multi_reduction <add>, %227, %cst_141 [1] : vector<8x32xf32> to vector<8xf32>
    %229 = vector.shape_cast %228 : vector<8xf32> to vector<8x1xf32>
    %cst_142 = arith.constant 3.200000e+01 : f32
    %230 = vector.broadcast %cst_142 : f32 to vector<8x1xf32>
    %231 = arith.divf %229, %230 : vector<8x1xf32>
    %232 = vector.broadcast %224 : vector<8x1xf32> to vector<8x32xf32>
    %233 = arith.subf %216, %232 : vector<8x32xf32>
    %cst_143 = arith.constant 9.99999974E-6 : f32
    %234 = vector.broadcast %cst_143 : f32 to vector<8x1xf32>
    %235 = arith.addf %231, %234 : vector<8x1xf32>
    %236 = math.rsqrt %235 : vector<8x1xf32>
    %237 = vector.broadcast %236 : vector<8x1xf32> to vector<8x32xf32>
    %238 = arith.mulf %233, %237 : vector<8x32xf32>
    %239 = vector.broadcast %218 : vector<1x32xf32> to vector<8x32xf32>
    %240 = arith.mulf %238, %239 : vector<8x32xf32>
    %241 = vector.broadcast %220 : vector<1x32xf32> to vector<8x32xf32>
    %242 = arith.addf %240, %241 : vector<8x32xf32>
    %243 = arith.truncf %242 : vector<8x32xf32> to vector<8x32xbf16>
    %c1_144 = arith.constant 1 : index
    %c0_145 = arith.constant 0 : index
    %c0_146 = arith.constant 0 : index
    %244 = vector.load %arg15[%c1_144, %c0_145, %c0_146] : memref<2x32x128xbf16, #tpu.memory_space<vmem>>, vector<1x32x128xbf16>
    %245 = vector.shape_cast %244 : vector<1x32x128xbf16> to vector<32x128xbf16>
    %cst_147 = arith.constant dense<0.000000e+00> : vector<8x128xf32>
    %246 = tpu.matmul %243, %245, %cst_147 {dimension_numbers = #tpu.dot_dimension_numbers<[1], [0], [0], [1], [0, 0, 1, 1], [], []>} : vector<8x32xbf16>, vector<32x128xbf16>, vector<8x128xf32> -> vector<8x128xf32>
    %c1_148 = arith.constant 1 : index
    %c0_149 = arith.constant 0 : index
    %c0_150 = arith.constant 0 : index
    %247 = vector.load %arg16[%c1_148, %c0_149, %c0_150] : memref<2x1x128xf32, #tpu.memory_space<vmem>>, vector<1x1x128xf32>
    %248 = vector.shape_cast %247 : vector<1x1x128xf32> to vector<1x128xf32>
    %249 = vector.broadcast %248 : vector<1x128xf32> to vector<8x128xf32>
    %250 = arith.addf %246, %249 : vector<8x128xf32>
    %cst_151 = arith.constant 5.000000e-01 : f32
    %251 = vector.broadcast %cst_151 : f32 to vector<8x128xf32>
    %252 = arith.mulf %251, %250 : vector<8x128xf32>
    %cst_152 = arith.constant 4.471500e-02 : f32
    %253 = vector.broadcast %cst_152 : f32 to vector<8x128xf32>
    %254 = arith.mulf %253, %250 : vector<8x128xf32>
    %255 = arith.mulf %254, %250 : vector<8x128xf32>
    %256 = arith.mulf %255, %250 : vector<8x128xf32>
    %257 = arith.addf %250, %256 : vector<8x128xf32>
    %cst_153 = arith.constant 0.797884583 : f32
    %258 = vector.broadcast %cst_153 : f32 to vector<8x128xf32>
    %259 = arith.mulf %258, %257 : vector<8x128xf32>
    %260 = math.tanh %259 : vector<8x128xf32>
    %cst_154 = arith.constant 1.000000e+00 : f32
    %261 = vector.broadcast %cst_154 : f32 to vector<8x128xf32>
    %262 = arith.addf %261, %260 : vector<8x128xf32>
    %263 = arith.mulf %252, %262 : vector<8x128xf32>
    %264 = arith.truncf %263 : vector<8x128xf32> to vector<8x128xbf16>
    %c1_155 = arith.constant 1 : index
    %c0_156 = arith.constant 0 : index
    %c0_157 = arith.constant 0 : index
    %265 = vector.load %arg17[%c1_155, %c0_156, %c0_157] : memref<2x128x32xbf16, #tpu.memory_space<vmem>>, vector<1x128x32xbf16>
    %266 = vector.shape_cast %265 : vector<1x128x32xbf16> to vector<128x32xbf16>
    %cst_158 = arith.constant dense<0.000000e+00> : vector<8x32xf32>
    %267 = tpu.matmul %264, %266, %cst_158 {dimension_numbers = #tpu.dot_dimension_numbers<[1], [0], [0], [1], [0, 0, 1, 1], [], []>} : vector<8x128xbf16>, vector<128x32xbf16>, vector<8x32xf32> -> vector<8x32xf32>
    %c1_159 = arith.constant 1 : index
    %c0_160 = arith.constant 0 : index
    %c0_161 = arith.constant 0 : index
    %268 = vector.load %arg18[%c1_159, %c0_160, %c0_161] : memref<2x1x32xf32, #tpu.memory_space<vmem>>, vector<1x1x32xf32>
    %269 = vector.shape_cast %268 : vector<1x1x32xf32> to vector<1x32xf32>
    %270 = vector.broadcast %269 : vector<1x32xf32> to vector<8x32xf32>
    %271 = arith.addf %267, %270 : vector<8x32xf32>
    %272 = arith.addf %216, %271 : vector<8x32xf32>
    %c0_162 = arith.constant 0 : index
    %c0_163 = arith.constant 0 : index
    %273 = vector.load %arg19[%c0_162, %c0_163] : memref<1x32xf32, #tpu.memory_space<vmem>>, vector<1x32xf32>
    %c0_164 = arith.constant 0 : index
    %c0_165 = arith.constant 0 : index
    %274 = vector.load %arg20[%c0_164, %c0_165] : memref<1x32xf32, #tpu.memory_space<vmem>>, vector<1x32xf32>
    %cst_166 = arith.constant dense<0.000000e+00> : vector<8xf32>
    %275 = vector.multi_reduction <add>, %272, %cst_166 [1] : vector<8x32xf32> to vector<8xf32>
    %276 = vector.shape_cast %275 : vector<8xf32> to vector<8x1xf32>
    %cst_167 = arith.constant 3.200000e+01 : f32
    %277 = vector.broadcast %cst_167 : f32 to vector<8x1xf32>
    %278 = arith.divf %276, %277 : vector<8x1xf32>
    %279 = vector.broadcast %278 : vector<8x1xf32> to vector<8x32xf32>
    %280 = arith.subf %272, %279 : vector<8x32xf32>
    %281 = arith.mulf %280, %280 : vector<8x32xf32>
    %cst_168 = arith.constant dense<0.000000e+00> : vector<8xf32>
    %282 = vector.multi_reduction <add>, %281, %cst_168 [1] : vector<8x32xf32> to vector<8xf32>
    %283 = vector.shape_cast %282 : vector<8xf32> to vector<8x1xf32>
    %cst_169 = arith.constant 3.200000e+01 : f32
    %284 = vector.broadcast %cst_169 : f32 to vector<8x1xf32>
    %285 = arith.divf %283, %284 : vector<8x1xf32>
    %286 = vector.broadcast %278 : vector<8x1xf32> to vector<8x32xf32>
    %287 = arith.subf %272, %286 : vector<8x32xf32>
    %cst_170 = arith.constant 9.99999974E-6 : f32
    %288 = vector.broadcast %cst_170 : f32 to vector<8x1xf32>
    %289 = arith.addf %285, %288 : vector<8x1xf32>
    %290 = math.rsqrt %289 : vector<8x1xf32>
    %291 = vector.broadcast %290 : vector<8x1xf32> to vector<8x32xf32>
    %292 = arith.mulf %287, %291 : vector<8x32xf32>
    %293 = vector.broadcast %273 : vector<1x32xf32> to vector<8x32xf32>
    %294 = arith.mulf %292, %293 : vector<8x32xf32>
    %295 = vector.broadcast %274 : vector<1x32xf32> to vector<8x32xf32>
    %296 = arith.addf %294, %295 : vector<8x32xf32>
    %297 = arith.truncf %296 : vector<8x32xf32> to vector<8x32xbf16>
    %c0_171 = arith.constant 0 : index
    %c0_172 = arith.constant 0 : index
    %298 = vector.load %arg21[%c0_171, %c0_172] : memref<32x128xbf16, #tpu.memory_space<vmem>>, vector<32x128xbf16>
    %cst_173 = arith.constant dense<0.000000e+00> : vector<8x128xf32>
    %299 = tpu.matmul %297, %298, %cst_173 {dimension_numbers = #tpu.dot_dimension_numbers<[1], [0], [0], [1], [0, 0, 1, 1], [], []>} : vector<8x32xbf16>, vector<32x128xbf16>, vector<8x128xf32> -> vector<8x128xf32>
    %c0_174 = arith.constant 0 : index
    %c0_175 = arith.constant 0 : index
    %300 = vector.load %arg22[%c0_174, %c0_175] : memref<8x128xf32, #tpu.memory_space<vmem>>, vector<8x128xf32>
    tpu.vector_store %arg22[%c0_174, %c0_175], %299 {strides = array<i32>} : memref<8x128xf32, #tpu.memory_space<vmem>>, vector<8x128xf32>,
    return
  }
  func.func @transform_0(%arg0: i32) -> (i32, i32) {
    %c0_i32 = arith.constant 0 : i32
    %c0_i32_0 = arith.constant 0 : i32
    return %arg0, %c0_i32 : i32, i32
  }
  func.func @transform_1(%arg0: i32) -> (i32, i32, i32) {
    %c0_i32 = arith.constant 0 : i32
    %c0_i32_0 = arith.constant 0 : i32
    %c0_i32_1 = arith.constant 0 : i32
    return %arg0, %c0_i32, %c0_i32_0 : i32, i32, i32
  }
  func.func @transform_2(%arg0: i32) -> (i32, i32, i32) {
    %c0_i32 = arith.constant 0 : i32
    %c0_i32_0 = arith.constant 0 : i32
    %c0_i32_1 = arith.constant 0 : i32
    %c0_i32_2 = arith.constant 0 : i32
    return %c0_i32, %c0_i32_0, %c0_i32_1 : i32, i32, i32
  }
  func.func @transform_3(%arg0: i32) -> (i32, i32, i32) {
    %c0_i32 = arith.constant 0 : i32
    %c0_i32_0 = arith.constant 0 : i32
    %c0_i32_1 = arith.constant 0 : i32
    %c0_i32_2 = arith.constant 0 : i32
    return %c0_i32, %c0_i32_0, %c0_i32_1 : i32, i32, i32
  }
  func.func @transform_4(%arg0: i32) -> (i32, i32, i32, i32) {
    %c0_i32 = arith.constant 0 : i32
    %c0_i32_0 = arith.constant 0 : i32
    %c0_i32_1 = arith.constant 0 : i32
    %c0_i32_2 = arith.constant 0 : i32
    %c0_i32_3 = arith.constant 0 : i32
    return %c0_i32, %c0_i32_0, %c0_i32_1, %c0_i32_2 : i32, i32, i32, i32
  }
  func.func @transform_5(%arg0: i32) -> (i32, i32, i32, i32) {
    %c0_i32 = arith.constant 0 : i32
    %c0_i32_0 = arith.constant 0 : i32
    %c0_i32_1 = arith.constant 0 : i32
    %c0_i32_2 = arith.constant 0 : i32
    %c0_i32_3 = arith.constant 0 : i32
    return %c0_i32, %c0_i32_0, %c0_i32_1, %c0_i32_2 : i32, i32, i32, i32
  }
  func.func @transform_6(%arg0: i32) -> (i32, i32, i32, i32) {
    %c0_i32 = arith.constant 0 : i32
    %c0_i32_0 = arith.constant 0 : i32
    %c0_i32_1 = arith.constant 0 : i32
    %c0_i32_2 = arith.constant 0 : i32
    %c0_i32_3 = arith.constant 0 : i32
    return %c0_i32, %c0_i32_0, %c0_i32_1, %c0_i32_2 : i32, i32, i32, i32
  }
  func.func @transform_7(%arg0: i32) -> (i32, i32, i32, i32) {
    %c0_i32 = arith.constant 0 : i32
    %c0_i32_0 = arith.constant 0 : i32
    %c0_i32_1 = arith.constant 0 : i32
    %c0_i32_2 = arith.constant 0 : i32
    %c0_i32_3 = arith.constant 0 : i32
    return %c0_i32, %c0_i32_0, %c0_i32_1, %c0_i32_2 : i32, i32, i32, i32
  }
  func.func @transform_8(%arg0: i32) -> (i32, i32, i32, i32) {
    %c0_i32 = arith.constant 0 : i32
    %c0_i32_0 = arith.constant 0 : i32
    %c0_i32_1 = arith.constant 0 : i32
    %c0_i32_2 = arith.constant 0 : i32
    %c0_i32_3 = arith.constant 0 : i32
    return %c0_i32, %c0_i32_0, %c0_i32_1, %c0_i32_2 : i32, i32, i32, i32
  }
  func.func @transform_9(%arg0: i32) -> (i32, i32, i32, i32) {
    %c0_i32 = arith.constant 0 : i32
    %c0_i32_0 = arith.constant 0 : i32
    %c0_i32_1 = arith.constant 0 : i32
    %c0_i32_2 = arith.constant 0 : i32
    %c0_i32_3 = arith.constant 0 : i32
    return %c0_i32, %c0_i32_0, %c0_i32_1, %c0_i32_2 : i32, i32, i32, i32
  }
  func.func @transform_10(%arg0: i32) -> (i32, i32, i32, i32) {
    %c0_i32 = arith.constant 0 : i32
    %c0_i32_0 = arith.constant 0 : i32
    %c0_i32_1 = arith.constant 0 : i32
    %c0_i32_2 = arith.constant 0 : i32
    %c0_i32_3 = arith.constant 0 : i32
    return %c0_i32, %c0_i32_0, %c0_i32_1, %c0_i32_2 : i32, i32, i32, i32
  }
  func.func @transform_11(%arg0: i32) -> (i32, i32, i32) {
    %c0_i32 = arith.constant 0 : i32
    %c0_i32_0 = arith.constant 0 : i32
    %c0_i32_1 = arith.constant 0 : i32
    %c0_i32_2 = arith.constant 0 : i32
    return %c0_i32, %c0_i32_0, %c0_i32_1 : i32, i32, i32
  }
  func.func @transform_12(%arg0: i32) -> (i32, i32, i32) {
    %c0_i32 = arith.constant 0 : i32
    %c0_i32_0 = arith.constant 0 : i32
    %c0_i32_1 = arith.constant 0 : i32
    %c0_i32_2 = arith.constant 0 : i32
    return %c0_i32, %c0_i32_0, %c0_i32_1 : i32, i32, i32
  }
  func.func @transform_13(%arg0: i32) -> (i32, i32, i32) {
    %c0_i32 = arith.constant 0 : i32
    %c0_i32_0 = arith.constant 0 : i32
    %c0_i32_1 = arith.constant 0 : i32
    %c0_i32_2 = arith.constant 0 : i32
    return %c0_i32, %c0_i32_0, %c0_i32_1 : i32, i32, i32
  }
  func.func @transform_14(%arg0: i32) -> (i32, i32, i32) {
    %c0_i32 = arith.constant 0 : i32
    %c0_i32_0 = arith.constant 0 : i32
    %c0_i32_1 = arith.constant 0 : i32
    %c0_i32_2 = arith.constant 0 : i32
    return %c0_i32, %c0_i32_0, %c0_i32_1 : i32, i32, i32
  }
  func.func @transform_15(%arg0: i32) -> (i32, i32, i32) {
    %c0_i32 = arith.constant 0 : i32
    %c0_i32_0 = arith.constant 0 : i32
    %c0_i32_1 = arith.constant 0 : i32
    %c0_i32_2 = arith.constant 0 : i32
    return %c0_i32, %c0_i32_0, %c0_i32_1 : i32, i32, i32
  }
  func.func @transform_16(%arg0: i32) -> (i32, i32, i32) {
    %c0_i32 = arith.constant 0 : i32
    %c0_i32_0 = arith.constant 0 : i32
    %c0_i32_1 = arith.constant 0 : i32
    %c0_i32_2 = arith.constant 0 : i32
    return %c0_i32, %c0_i32_0, %c0_i32_1 : i32, i32, i32
  }
  func.func @transform_17(%arg0: i32) -> (i32, i32, i32) {
    %c0_i32 = arith.constant 0 : i32
    %c0_i32_0 = arith.constant 0 : i32
    %c0_i32_1 = arith.constant 0 : i32
    %c0_i32_2 = arith.constant 0 : i32
    return %c0_i32, %c0_i32_0, %c0_i32_1 : i32, i32, i32
  }
  func.func @transform_18(%arg0: i32) -> (i32, i32) {
    %c0_i32 = arith.constant 0 : i32
    %c0_i32_0 = arith.constant 0 : i32
    %c0_i32_1 = arith.constant 0 : i32
    return %c0_i32, %c0_i32_0 : i32, i32
  }
  func.func @transform_19(%arg0: i32) -> (i32, i32) {
    %c0_i32 = arith.constant 0 : i32
    %c0_i32_0 = arith.constant 0 : i32
    %c0_i32_1 = arith.constant 0 : i32
    return %c0_i32, %c0_i32_0 : i32, i32
  }
  func.func @transform_20(%arg0: i32) -> (i32, i32) {
    %c0_i32 = arith.constant 0 : i32
    %c0_i32_0 = arith.constant 0 : i32
    %c0_i32_1 = arith.constant 0 : i32
    return %c0_i32, %c0_i32_0 : i32, i32
  }
  func.func @transform_21(%arg0: i32) -> (i32, i32) {
    %c0_i32 = arith.constant 0 : i32
    %c0_i32_0 = arith.constant 0 : i32
    return %arg0, %c0_i32 : i32, i32
  }
}

</mosaic_0001>

<bundles_post_ra>
// kernel: gpt_lm_forward.1
= control target key start
LH: loop header
LB: loop body
LE: loop exit
PB: predicated region body
PF: predicated region fallthrough
CT: control target
= control target key end

     0   :  { %s4123_s0 = inlined_call_operand.vmem [shape: f32[16,32], index: 0, kind: input, shape index: {}]   ;;  %s4124_s1 = inlined_call_operand.vmem [shape: f32[2,8,8], index: 1, kind: input, shape index: {}]   ;;  %s4125_s2 = inlined_call_operand.vmem [shape: f32[2,1,32], index: 2, kind: input, shape index: {}]   ;;  %s4126_s3 = inlined_call_operand.vmem [shape: f32[2,1,32], index: 3, kind: input, shape index: {}]   ;;  %s4127_s4 = inlined_call_operand.vmem [shape: bf16[2,2,32,16], index: 4, kind: input, shape index: {}]   ;;  %s4128_s5 = inlined_call_operand.vmem [shape: bf16[2,2,32,16], index: 5, kind: input, shape index: {}]   ;;  %s4129_s6 = inlined_call_operand.vmem [shape: bf16[2,2,32,16], index: 6, kind: input, shape index: {}]   ;;  %s4130_s7 = inlined_call_operand.vmem [shape: f32[2,2,1,16], index: 7, kind: input, shape index: {}]   ;;  %s4131_s8 = inlined_call_operand.vmem [shape: f32[2,2,1,16], index: 8, kind: input, shape index: {}]   ;;  %s4132_s9 = inlined_call_operand.vmem [shape: f32[2,2,1,16], index: 9, kind: input, shape index: {}]   ;;  %s4133_s10 = inlined_call_operand.vmem [shape: bf16[2,2,16,32], index: 10, kind: input, shape index: {}]   ;;  %s4134_s11 = inlined_call_operand.vmem [shape: f32[2,1,32], index: 11, kind: input, shape index: {}]   ;;  %s4135_s12 = inlined_call_operand.vmem [shape: f32[2,1,32], index: 12, kind: input, shape index: {}]   ;;  %s4136_s13 = inlined_call_operand.vmem [shape: f32[2,1,32], index: 13, kind: input, shape index: {}]   ;;  %s4137_s14 = inlined_call_operand.vmem [shape: bf16[2,32,128], index: 14, kind: input, shape index: {}]   ;;  %s4138_s15 = inlined_call_operand.vmem [shape: f32[2,1,128], index: 15, kind: input, shape index: {}]   ;;  %s4139_s16 = inlined_call_operand.vmem [shape: bf16[2,128,32], index: 16, kind: input, shape index: {}]   ;;  %s4140_s17 = inlined_call_operand.vmem [shape: f32[2,1,32], index: 17, kind: input, shape index: {}]   ;;  %s4141_s18 = inlined_call_operand.vmem [shape: f32[1,32], index: 18, kind: input, shape index: {}]   ;;  %s4142_s19 = inlined_call_operand.vmem [shape: f32[1,32], index: 19, kind: input, shape index: {}]   ;;  %s4143_s20 = inlined_call_operand.vmem [shape: bf16[32,128], index: 20, kind: input, shape index: {}]   ;;  %s4144_s21 = inlined_call_operand.hbm [shape: f32[16,128], index: 21, kind: output, shape index: {}]  }
   0x1   :  { %4158 = sst [smem:[#allocation11_spill]] %s4123_s0 }
   0x2   :  { %4159 = sst [smem:[#allocation12_spill]] %s4124_s1 }
   0x3   :  { %4160 = sst [smem:[#allocation13_spill]] %s4125_s2 }
   0x4   :  { %4161 = sst [smem:[#allocation14_spill]] %s4126_s3 }
   0x5   :  { %4162 = sst [smem:[#allocation15_spill]] %s4127_s4 }
   0x6   :  { %4163 = sst [smem:[#allocation16_spill]] %s4128_s5 }
   0x7   :  { %4164 = sst [smem:[#allocation17_spill]] %s4129_s6 }
   0x8   :  { %4165 = sst [smem:[#allocation18_spill]] %s4130_s7 }
   0x9   :  { %4166 = sst [smem:[#allocation19_spill]] %s4144_s21 }
   0xa   :  { %26 = vsyncpa [#allocation3], 0 }
   0xb   :  { %28 = vsyncpa [#allocation3 + $0x1], 0  ;;  %s3580_s2 = smov 0   ;;  %s3582_s25 = smov 0  }
   0xc   :  { %s3584_s26 = smov 0   ;;  %s3586_s27 = smov 0  }
   0xd LB: > { %4167 = sst [smem:[#allocation5_spill]] %s3453_s2  ;;  %s3601_s3 = sadd.s32 4294967295, %s3465_s27   ;;  %s3465_s27 = sphi %s3586_s27, %s4188_s27   ;;  %s3461_s26 = sphi %s3584_s26, %s4190_s26   ;;  %s3457_s25 = sphi %s3582_s25, %s4192_s25   ;;  %s3453_s2 = sphi %s3580_s2, %s4191_s2  }
   0xe   : > { %4168 = sst [smem:[#allocation6_spill]] %s3461_s26  ;;  %s2786_s28 = sadd.s32 4294967294, %s3465_s27  }
   0xf   : > { %4169 = sst [smem:[#allocation7_spill]] %s3465_s27  ;;  %s3605_s29 = sadd.s32 1, %s3465_s27  }
  0x10   : > { %4170 = sst [smem:[#allocation8_spill]] %s3605_s29  ;;  %s492_s0 = sadd.s32 1, %s3461_s26 }
  0x11   : > { %s489_s4 = ssub.s32 %s3465_s27, %s3605_s29  ;;  %p502_p0 = scmp.ne.s32.totalorder %s3461_s26, %s3457_s25 }
  0x12   : > { %p490_p1 = scmp.eq.s32.totalorder %s489_s4, 0  ;;  %p503_p2 = scmp.eq.s32.totalorder %s3601_s3, 1 }
  0x13   : > { %p508_p3 = scmp.ne.s32.totalorder %s3457_s25, %s3453_s2  ;;  %p509_p4 = scmp.eq.s32.totalorder %s2786_s28, 1 }
  0x14   : > { %s3616_s30 = scalar_select %p490_p1, %s3461_s26, %s492_s0  }
  0x15   : > { %p3618_p5 = por %p503_p2, %p502_p0  ;;  %p3622_p6 = por %p509_p4, %p508_p3 }
  0x16   : > { %4171 = sst [smem:[#allocation9_spill]] %s3616_s30  ;;  %p2789_p7 = scmp.ge.s32.totalorder %s3465_s27, 1 }
  0x17   : > { %s4173_s22 = scalar_select %p3622_p6, 1, 0 }
  0x18   : > { %p598_p8 = scmp.lt.s32.totalorder %s3465_s27, 3 }
  0x19   : > { %4174 = sst [smem:[#allocation10_spill]] %s4173_s22 }
  0x1a   : > { %p599_p9 = pnand %p2789_p7, %p598_p8 }
  0x1b   : > { %p661_p10 = scmp.lt.s32.totalorder (!%p599_p9), %s3601_s3, 1  ;;  %vm674_vm0 = vcmask (!%p599_p9), 261120   ;;  %s4175_s0 = sld [smem:[#allocation11_spill]] (!%p599_p9)  ;;  %v3467_v9 = vmov (!%p599_p9), 0.0   ;;  %vm3468_vm1 = vmmov (!%p599_p9), 0   ;;  %vm1089_vm2 = vcmask (!%p599_p9), 130048  }
  0x1c   : > { %602 = sbr.rel (%p599_p9) target bundleno = 5170 (0x1432), region = 104  ;;  %s4176_s29 = sld [smem:[#allocation15_spill]] (!%p599_p9)  ;;  %3050 = vmatprep.subr.bf16.mxu1 (!%p599_p9), %v3467_v9  ;;  %3066 = vmatprep.subr.bf16.mxu0 (!%p599_p9), %v3467_v9  ;;  %v2803_v30 = vld [vmem:[%s4131_s8] ss:$0 sm:$0xff] (!%p599_p9)  ;;  %vm1212_vm3 = vcmask (!%p599_p9), 1043456   ;;  %vm1182_vm4 = vcmask (!%p599_p9), 64512  }
  0x1d   : > { %3054 = vmatprep.mubr.msk.bf16.mxu1 (!%p599_p9), %vm3468_vm1, %v3467_v9  ;;  %3070 = vmatprep.mubr.msk.bf16.mxu0 (!%p599_p9), %vm3468_vm1, %v3467_v9  ;;  %s4178_s28 = sld [smem:[#allocation13_spill]] (!%p599_p9)  ;;  %s4179_s30 = sld [smem:[#allocation14_spill]] (!%p599_p9)  ;;  %v2811_v43 = vld [vmem:[%s4132_s9] ss:$0 sm:$0xff] (!%p599_p9)  ;;  %v2804_v57 = vld [vmem:[%s4131_s8 + $0x1] ss:$0 sm:$0xff] (!%p599_p9) }
  0x1e   : > { %s4180_s6 = sld [smem:[#allocation17_spill]] (!%p599_p9)  ;;  %s4181_s7 = sld [smem:[#allocation18_spill]] (!%p599_p9) }
  0x1f   : > { %s4183_s26 = sld [smem:[#allocation12_spill]] (!%p599_p9)  ;;  %s2960_s22 = sshll.u32 (!%p599_p9), %s3601_s3, 7 }
  0x22   : > { %v3323_v7 = vld [vmem:[%s4176_s29] sm:$0xff] (!%p599_p9)   ;;  %v3325_v10 = vld [vmem:[%s4176_s29 + $0x8] sm:$0xff] (!%p599_p9)   ;;  %v3327_v21 = vld [vmem:[%s4176_s29 + $0x10] sm:$0xff] (!%p599_p9)  }
  0x23   : > { %s3630_s23 = scalar_select %p661_p10, %s3601_s3, 1  ;;  %3051 = vmatpush3.bf16.msra.mxu1 %v3323_v7  ;;  %v2793_v16 = vld [vmem:[%s4178_s28] ss:$0 sm:$0xff]  ;;  %v3329_v24 = vld [vmem:[%s4176_s29 + $0x18] sm:$0xff]  }
  0x24   : > { %3052 = vmatprep.subr.bf16.mxu1 %v3467_v9  ;;  %v2794_v18 = vld [vmem:[%s4179_s30] ss:$0 sm:$0xff]  ;;  %v3330_v25 = vld [vmem:[%s4180_s6 + $0x8] sm:$0xff]   ;;  %v3333_v28 = vld [vmem:[%s4180_s6 + $0x10] sm:$0xff]   ;;  %s3469_s3 = smov [#allocation2]  }
  0x25   : > { %s4152_s1 = sshll.u32 %s3630_s23, 3  ;;  %v3328_v22 = vld [vmem:[%s4180_s6] sm:$0xff]   ;;  %v3334_v29 = vld [vmem:[%s4180_s6 + $0x18] sm:$0xff]  }
  0x26   : > { %s664_s4 = scalar_lea.vmem %s4175_s0, %s4152_s1  ;;  %s4177_s0 = sld [smem:[#allocation16_spill]]  ;;  %v2795_v41 = vld [vmem:[%s4181_s7] ss:$0 sm:$0xff] }
  0x27   : > { %v3638_v0 = vld [vmem:[%s664_s4] sm:$0xff]  ;;  %3053 = vmatpush3.bf16.msra.mxu1 %v3325_v10  ;;  %s4182_s1 = sshll.u32 %s3630_s23, 3 }
  0x28   : > { %v675_v1 = vsel %vm674_vm0, %v3638_v0, 0.0  ;;  %3058 = vmatprep.subr.bf16.mxu1 %v3467_v9  ;;  %s668_s21 = scalar_lea.vmem %s4183_s26, %s4182_s1 }
  0x29   : > { %676 = vadd.xlane.f32.xlu0 %v675_v1  ;;  %v2796_v1 = vld [vmem:[%s4181_s7 + $0x1] ss:$0 sm:$0xff] }
  0x2c   : > { %v3324_v8 = vld [vmem:[%s4177_s0] sm:$0xff]   ;;  %v3326_v11 = vld [vmem:[%s4177_s0 + $0x8] sm:$0xff]   ;;  %v3331_v26 = vld [vmem:[%s4177_s0 + $0x10] sm:$0xff]  }
  0x2d   : > { %3067 = vmatpush3.bf16.msra.mxu0 %v3324_v8  ;;  %v3332_v27 = vld [vmem:[%s4177_s0 + $0x18] sm:$0xff]  }
  0x2e   : > { %3068 = vmatprep.subr.bf16.mxu0 %v3467_v9 }
  0x31   : > { %3069 = vmatpush3.bf16.msra.mxu0 %v3326_v11 }
  0x32   : > { %3082 = vmatprep.subr.bf16.mxu0 %v3467_v9 }
  0xb6   : > { %v677_v2 = vpop.xlane.xlu0 %676 }
  0xb7   : > { %v679_v3 = vmul.f32 0.03125, %v677_v2 }
  0xb9   : > { %v680_v4 = vsub.f32 %v3638_v0, %v679_v3  ;;  %v2812_v3 = vld [vmem:[%s4132_s9 + $0x1] ss:$0 sm:$0xff] }
  0xbb   : > { %v681_v5 = vmul.f32 %v680_v4, %v680_v4 }
  0xbd   : > { %v682_v6 = vsel %vm674_vm0, %v681_v5, 0.0 }
  0xbe   : > { %683 = vadd.xlane.f32.xlu0 %v682_v6 }
 0x14b   : > { %v684_v12 = vpop.xlane.xlu0 %683 }
 0x14c   : > { %v685_v13 = vmul.f32 0.03125, %v684_v12 }
 0x14e   : > { %v686_v14 = vadd.f32 1e-05, %v685_v13 }
 0x150   : > { %3373 = vrsqrt.f32 %v686_v14  ;;  %v3759_v14 = vld [vmem:[%s668_s21] sm:$0xff]  ;;  %s658_s21 = sand.u32 1, %s3457_s25  }
 0x151   : > { %s2790_s23 = sshll.u32 %s658_s21, 3  ;;  %s2702_s26 = scalar_lea.sflag [#allocation3], %s658_s21 }
 0x152   : > { %s660_s2 = scalar_lea.vmem [#allocation2], %s2790_s23  ;;  %s3407_s23 = sshll.u32 %s3469_s3, 4  ;;  %s3408_s23 = int_to_ptr.vmem [resolvable:$false] %s3407_s23 }
 0x153   : > { %s2715_s27 = sshll.u32 %s660_s2, 4  ;;  %s4078_s27 = int_to_ptr.vmem [resolvable:$true] %s2715_s27 }
 0x154   : > { %p3410_p0 = scmp.lt.s32.totalorder %s4078_s27, %s3408_s23 }
 0x15a   : > { %v3374_v15 = vpop.eup %3373 }
 0x15b   : > { %v688_v17 = vmul.f32 %v3374_v15, %v680_v4 }
 0x15d   : > { %v695_v19 = vmul.f32 %v2793_v16, %v688_v17 }
 0x15f   : > { %v702_v20 = vadd.f32 %v2794_v18, %v695_v19 }
 0x161   : > { %v703_v23 = vpack.c.bf16 %v702_v20, %v702_v20 }
 0x163   : > { %3055 = vmatmul.mubr.msk.bf16.vlgmr.msra.gmra.mrb[0].mxu1 %vm674_vm0, %v703_v23  ;;  %3071 = vmatmul.mubr.msk.bf16.vlgmr.msra.gmra.mrb[0].mxu0 %vm674_vm0, %v703_v23 }
 0x164   : > { %3059 = vmatpush3.bf16.msra.mxu1 %v3327_v21  ;;  %3083 = vmatpush3.bf16.msra.mxu0 %v3328_v22 }
 0x165   : > { %3060 = vmatprep.subr.bf16.mxu1 %v3467_v9  ;;  %3084 = vmatprep.subr.bf16.mxu0 %v3467_v9 }
 0x166   : > { %3062 = vmatprep.mubr.msk.bf16.mxu1 %vm3468_vm1, %v3467_v9  ;;  %3086 = vmatprep.mubr.msk.bf16.mxu0 %vm3468_vm1, %v3467_v9 }
 0x168   : > { %3061 = vmatpush3.bf16.msra.mxu1 %v3329_v24  ;;  %3085 = vmatpush3.bf16.msra.mxu0 %v3330_v25 }
 0x169   : > { %3074 = vmatprep.subr.bf16.mxu1 %v3467_v9  ;;  %3098 = vmatprep.subr.bf16.mxu0 %v3467_v9 }
 0x16b   : > { %3063 = vmatmul.mubr.msk.bf16.vlgmr.msra.gmra.mrb[4].mxu1 %vm674_vm0, %v703_v23  ;;  %3087 = vmatmul.mubr.msk.bf16.vlgmr.msra.gmra.mrb[4].mxu0 %vm674_vm0, %v703_v23 }
 0x16c   : > { %3075 = vmatpush3.bf16.msra.mxu1 %v3331_v26  ;;  %3078 = vmatprep.mubr.msk.bf16.mxu1 %vm3468_vm1, %v3467_v9 }
 0x16d   : > { %3076 = vmatprep.subr.bf16.mxu1 %v3467_v9  ;;  %3100 = vmatprep.mubr.msk.bf16.mxu0 %vm3468_vm1, %v3467_v9 }
 0x170   : > { %3077 = vmatpush3.bf16.msra.mxu1 %v3332_v27 }
 0x171   : > { %3090 = vmatprep.subr.bf16.mxu1 %v3467_v9 }
 0x173   : > { %3079 = vmatmul.mubr.msk.bf16.vlgmr.msra.gmra.mrb[8].mxu1 %vm674_vm0, %v703_v23 }
 0x174   : > { %3091 = vmatpush3.bf16.msra.mxu1 %v3333_v28  ;;  %3094 = vmatprep.mubr.msk.bf16.mxu1 %vm3468_vm1, %v3467_v9 }
 0x175   : > { %3092 = vmatprep.subr.bf16.mxu1 %v3467_v9 }
 0x178   : > { %3093 = vmatpush3.bf16.msra.mxu1 %v3334_v29 }
 0x179   : > { %3104 = vmatprep.subr.bf16.mxu1 %v3467_v9 }
 0x17b   : > { %3095 = vmatmul.mubr.msk.bf16.vlgmr.msra.gmra.mrb[12].mxu1 %vm674_vm0, %v703_v23 }
 0x17c   : > { %3106 = vmatprep.mubr.msk.bf16.mxu1 %vm3468_vm1, %v3467_v9 }
 0x236   : > { %v775_v31 = vpop.f32.mrb[0].mxu1  ;;  %v901_v32 = vpop.f32.mrb[0].mxu0 }
 0x237   : > { %v902_v33 = vadd.f32 %v2803_v30, %v901_v32  ;;  %v3056_v34 = vpop.f32.mrb[1].mxu1  ;;  %v3072_v35 = vpop.f32.mrb[1].mxu0  ;;  %v776_v44 = vadd.f32 %v2795_v41, %v775_v31 }
 0x238   : > { %v778_v36 = vpop.f32.mrb[2].mxu1  ;;  %v904_v37 = vpop.f32.mrb[2].mxu0 }
 0x239   : > { %v1087_v38 = vpack.c.bf16 %v902_v33, %v902_v33  ;;  %v3057_v39 = vpop.f32.mrb[3].mxu1  ;;  %v3073_v40 = vpop.f32.mrb[3].mxu0  ;;  %v1085_v52 = vpack.c.bf16 %v776_v44, %v776_v44 }
 0x23b   : > { %v1094_v42 = vsel %vm1089_vm2, %v1087_v38, 0 }
 0x23c   : > { %3099 = vmatpush3.bf16.xpose.msra.mxu0 %v1094_v42 }
 0x23d   : > { %3110 = vmatprep.subr.bf16.mxu0 %v3467_v9 }
 0x23e   : > { %v827_v45 = vpop.f32.mrb[4].mxu1  ;;  %v1027_v46 = vpop.f32.mrb[4].mxu0 }
 0x23f   : > { %v1028_v47 = vadd.f32 %v2811_v43, %v1027_v46  ;;  %v3064_v48 = vpop.f32.mrb[5].mxu1  ;;  %v3088_v49 = vpop.f32.mrb[5].mxu0  ;;  %v828_v4 = vadd.f32 %v2796_v1, %v827_v45  ;;  %v3335_v45 = vld [vmem:[%s4133_s10] sm:$0xff]   ;;  %v3336_v46 = vld [vmem:[%s4133_s10 + $0x8] sm:$0xff]  }
 0x240   : > { %v830_v50 = vpop.f32.mrb[6].mxu1  ;;  %v1030_v51 = vpop.f32.mrb[6].mxu0  ;;  %v2827_v1 = vld [vmem:[%s4134_s11] ss:$0 sm:$0xff] }
 0x241   : > { %v1207_v53 = vpack.c.bf16 %v1028_v47, %v1028_v47  ;;  %v3065_v54 = vpop.f32.mrb[7].mxu1  ;;  %v3089_v55 = vpop.f32.mrb[7].mxu0  ;;  %v1086_v10 = vpack.c.bf16 %v828_v4, %v828_v4 }
 0x243   : > { %v1214_v56 = vsel %vm1212_vm3, %v1207_v53, 0  ;;  %3101 = vmatmul.mubr.msk.bf16.vlgmr.msra.gmra.mrb[8].mxu0 %vm1089_vm2, %v1085_v52 }
 0x244   : > { %3111 = vmatpush3.bf16.msra.mxu0 %v1214_v56  ;;  %3112 = vmatprep.mubr.msk.bf16.mxu0 %vm3468_vm1, %v3467_v9 }
 0x245   : > { %3122 = vmatprep.subr.bf16.mxu0 %v3467_v9 }
 0x246   : > { %v953_v58 = vpop.f32.mrb[8].mxu1 }
 0x247   : > { %v954_v59 = vadd.f32 %v2804_v57, %v953_v58  ;;  %v3080_v60 = vpop.f32.mrb[9].mxu1 }
 0x248   : > { %v956_v61 = vpop.f32.mrb[10].mxu1 }
 0x249   : > { %v1088_v62 = vpack.c.bf16 %v954_v59, %v954_v59  ;;  %v3081_v63 = vpop.f32.mrb[11].mxu1 }
 0x24b   : > { %v1140_v2 = vsel %vm1089_vm2, %v1088_v62, 0 }
 0x24c   : > { %3105 = vmatpush3.bf16.xpose.msra.mxu1 %v1140_v2 }
 0x24d   : > { %3116 = vmatprep.subr.bf16.mxu1 %v3467_v9 }
 0x24e   : > { %v1079_v5 = vpop.f32.mrb[12].mxu1 }
 0x24f   : > { %v1080_v6 = vadd.f32 %v2812_v3, %v1079_v5  ;;  %v3096_v7 = vpop.f32.mrb[13].mxu1 }
 0x250   : > { %v1082_v8 = vpop.f32.mrb[14].mxu1 }
 0x251   : > { %v1208_v11 = vpack.c.bf16 %v1080_v6, %v1080_v6  ;;  %v3097_v12 = vpop.f32.mrb[15].mxu1 }
 0x253   : > { %v1260_v13 = vsel %vm1212_vm3, %v1208_v11, 0  ;;  %3107 = vmatmul.mubr.msk.bf16.vlgmr.msra.gmra.mrb[16].mxu1 %vm1089_vm2, %v1086_v10 }
 0x254   : > { %3117 = vmatpush3.bf16.msra.mxu1 %v1260_v13  ;;  %3118 = vmatprep.mubr.msk.bf16.mxu1 %vm3468_vm1, %v3467_v9 }
 0x255   : > { %3128 = vmatprep.subr.bf16.mxu1 %v3467_v9 }
 0x316   : > { %v1130_v15 = vpop.f32.mrb[8].mxu0 }
 0x317   : > { %v1131_v16 = vadd.f32 %v1130_v15, %v3759_v14  ;;  %v3102_v17 = vpop.f32.mrb[9].mxu0 }
 0x318   : > { %v1133_v18 = vpop.f32.mrb[10].mxu0  ;;  %v3339_v17 = vld [vmem:[%s4139_s16] sm:$0xff]  }
 0x319   : > { %v3103_v19 = vpop.f32.mrb[11].mxu0  ;;  %v1183_v20 = vsel %vm1182_vm4, %v1131_v16, -inf }
 0x31a   : > { %1184 = vmax.xlane.f32.xlu1 %v1183_v20 }
 0x326   : > { %v1176_v21 = vpop.f32.mrb[16].mxu1 }
 0x327   : > { %v1177_v22 = vadd.f32 %v1176_v21, %v3759_v14  ;;  %v3108_v23 = vpop.f32.mrb[17].mxu1 }
 0x328   : > { %v1179_v24 = vpop.f32.mrb[18].mxu1 }
 0x329   : > { %v3109_v25 = vpop.f32.mrb[19].mxu1  ;;  %v1186_v26 = vsel %vm1182_vm4, %v1177_v22, -inf  ;;  %v2829_v24 = vld [vmem:[%s4136_s13] ss:$0 sm:$0xff] }
 0x32a   : > { %1187 = vmax.xlane.f32.xlu1 %v1186_v26 }
 0x3a7   : > { %v1185_v27 = vpop.xlane.xlu1 %1184 }
 0x3a8   : > { %v1189_v28 = vsub.f32 %v1131_v16, %v1185_v27  ;;  %v3337_v16 = vld [vmem:[%s4137_s14] sm:$0xff]  }
 0x3aa   : > { %v1191_v29 = vmul.f32 1.442695, %v1189_v28  ;;  %v3340_v28 = vld [vmem:[%s4139_s16 + $0x8] sm:$0xff]  }
 0x3ac   : > { %3375 = vpow2.f32 %v1191_v29  ;;  %v3341_v29 = vld [vmem:[%s4139_s16 + $0x10] sm:$0xff]  }
 0x3b6   : > { %v3376_v30 = vpop.eup %3375 }
 0x3b7   : > { %v1188_v31 = vpop.xlane.xlu1 %1187  ;;  %v1195_v32 = vsel %vm1182_vm4, %v3376_v30, 0.0 }
 0x3b8   : > { %v1190_v33 = vsub.f32 %v1177_v22, %v1188_v31  ;;  %1196 = vadd.xlane.f32.xlu0 %v1195_v32  ;;  %v2828_v22 = vld [vmem:[%s4135_s12] ss:$0 sm:$0xff]  ;;  %v3344_v32 = vld [vmem:[%s4139_s16 + $0x28] sm:$0xff]  }
 0x3b9   : > { %v3343_v31 = vld [vmem:[%s4139_s16 + $0x20] sm:$0xff]  }
 0x3ba   : > { %v1193_v34 = vmul.f32 1.442695, %v1190_v33  ;;  %v3345_v33 = vld [vmem:[%s4139_s16 + $0x30] sm:$0xff]  }
 0x3bc   : > { %3377 = vpow2.f32 %v1193_v34  ;;  %v3346_v34 = vld [vmem:[%s4139_s16 + $0x38] sm:$0xff]  }
 0x3c6   : > { %v3378_v35 = vpop.eup %3377 }
 0x3c7   : > { %v1198_v36 = vsel %vm1182_vm4, %v3378_v35, 0.0 }
 0x3c8   : > { %1199 = vadd.xlane.f32.xlu1 %v1198_v36 }
 0x445   : > { %v1197_v37 = vpop.xlane.xlu0 %1196 }
 0x446   : > { %3379 = vrcp.f32 %v1197_v37 }
 0x450   : > { %v3380_v38 = vpop.eup %3379 }
 0x451   : > { %v1203_v39 = vmul.f32 %v3380_v38, %v3376_v30  ;;  %v3342_v30 = vld [vmem:[%s4139_s16 + $0x18] sm:$0xff]  }
 0x453   : > { %v1205_v40 = vpack.c.bf16 %v1203_v39, %v1203_v39 }
 0x455   : > { %3113 = vmatmul.mubr.msk.bf16.vlgmr.msra.gmra.mrb[12].mxu0 %vm1182_vm4, %v1205_v40  ;;  %v1200_v41 = vpop.xlane.xlu1 %1199 }
 0x456   : > { %3381 = vrcp.f32 %v1200_v41  ;;  %3124 = vmatprep.mubr.msk.bf16.mxu0 %vm3468_vm1, %v3467_v9  ;;  %3123 = vmatpush3.bf16.msra.mxu0 %v3335_v45 }
 0x457   : > { %3134 = vmatprep.subr.bf16.mxu0 %v3467_v9 }
 0x460   : > { %v3382_v42 = vpop.eup %3381 }
 0x461   : > { %v1204_v43 = vmul.f32 %v3382_v42, %v3378_v35  ;;  %v2830_v35 = vld [vmem:[%s4138_s15] ss:$0 sm:$0xff] }
 0x463   : > { %v1206_v44 = vpack.c.bf16 %v1204_v43, %v1204_v43 }
 0x465   : > { %3119 = vmatmul.mubr.msk.bf16.vlgmr.msra.gmra.mrb[20].mxu1 %vm1182_vm4, %v1206_v44 }
 0x466   : > { %3130 = vmatprep.mubr.msk.bf16.mxu1 %vm3468_vm1, %v3467_v9  ;;  %3129 = vmatpush3.bf16.msra.mxu1 %v3336_v46 }
 0x467   : > { %3142 = vmatprep.subr.bf16.mxu1 %v3467_v9 }
 0x528   : > { %v1250_v47 = vpop.f32.mrb[12].mxu0 }
 0x529   : > { %v1302_v48 = vpack.c.bf16 %v1250_v47, %v1250_v47  ;;  %v3114_v49 = vpop.f32.mrb[13].mxu0 }
 0x52a   : > { %v1253_v50 = vpop.f32.mrb[14].mxu0 }
 0x52b   : > { %v3115_v51 = vpop.f32.mrb[15].mxu0  ;;  %3125 = vmatmul.mubr.msk.bf16.vlgmr.msra.gmra.mrb[16].mxu0 %vm1089_vm2, %v1302_v48 }
 0x52c   : > { %3138 = vmatprep.mubr.msk.bf16.mxu0 %vm3468_vm1, %v3467_v9  ;;  %3135 = vmatpush3.bf16.msra.mxu0 %v3337_v16  ;;  %v2834_v51 = vld [vmem:[%s4140_s17] ss:$0 sm:$0xff]  ;;  %v3351_v16 = vld [vmem:[%s4176_s29 + $0x30] sm:$0xff]  }
 0x52d   : > { %3136 = vmatprep.subr.bf16.mxu0 %v3467_v9 }
 0x538   : > { %v1296_v52 = vpop.f32.mrb[20].mxu1 }
 0x539   : > { %v1303_v53 = vpack.c.bf16 %v1296_v52, %v1296_v52  ;;  %v3120_v54 = vpop.f32.mrb[21].mxu1 }
 0x53a   : > { %v1299_v55 = vpop.f32.mrb[22].mxu1 }
 0x53b   : > { %v3121_v56 = vpop.f32.mrb[23].mxu1  ;;  %3131 = vmatmul.mubr.msk.bf16.vlgmr.msra.gmra.mrb[24].mxu1 %vm1089_vm2, %v1303_v53 }
 0x53c   : > { %3158 = vmatprep.mubr.msk.bf16.mxu1 %vm3468_vm1, %v3467_v9  ;;  %3143 = vmatpush3.bf16.msra.mxu1 %v3339_v17  ;;  %v3352_v17 = vld [vmem:[%s4176_s29 + $0x38] sm:$0xff]  }
 0x53d   : > { %3144 = vmatprep.subr.bf16.mxu1 %v3467_v9 }
 0x540   : > { %3145 = vmatpush3.bf16.msra.mxu1 %v3340_v28 }
 0x541   : > { %3146 = vmatprep.subr.bf16.mxu1 %v3467_v9 }
 0x544   : > { %3147 = vmatpush3.bf16.msra.mxu1 %v3341_v29 }
 0x545   : > { %3148 = vmatprep.subr.bf16.mxu1 %v3467_v9 }
 0x548   : > { %3149 = vmatpush3.bf16.msra.mxu1 %v3342_v30 }
 0x549   : > { %3150 = vmatprep.subr.bf16.mxu1 %v3467_v9 }
 0x54c   : > { %3151 = vmatpush3.bf16.msra.mxu1 %v3343_v31 }
 0x54d   : > { %3152 = vmatprep.subr.bf16.mxu1 %v3467_v9 }
 0x550   : > { %3153 = vmatpush3.bf16.msra.mxu1 %v3344_v32 }
 0x551   : > { %3154 = vmatprep.subr.bf16.mxu1 %v3467_v9 }
 0x554   : > { %3155 = vmatpush3.bf16.msra.mxu1 %v3345_v33 }
 0x555   : > { %3156 = vmatprep.subr.bf16.mxu1 %v3467_v9 }
 0x558   : > { %3157 = vmatpush3.bf16.msra.mxu1 %v3346_v34 }
 0x559   : > { %3194 = vmatprep.subr.bf16.mxu1 %v3467_v9 }
 0x5fe   : > { %v1351_v57 = vpop.f32.mrb[16].mxu0 }
 0x5ff   : > { %v3126_v58 = vpop.f32.mrb[17].mxu0  ;;  %v1406_v62 = vsel %vm674_vm0, %v1351_v57, 0.0 }
 0x600   : > { %v1354_v59 = vpop.f32.mrb[18].mxu0 }
 0x601   : > { %v3127_v60 = vpop.f32.mrb[19].mxu0 }
 0x60e   : > { %v1400_v61 = vpop.f32.mrb[24].mxu1 }
 0x60f   : > { %v1407_v63 = vsel %vm674_vm0, %v1400_v61, 0.0  ;;  %v3132_v2 = vpop.f32.mrb[25].mxu1 }
 0x610   : > { %v1408_v3 = vadd.f32 %v1407_v63, %v1406_v62  ;;  %v1403_v4 = vpop.f32.mrb[26].mxu1  ;;  %v3348_v2 = vld [vmem:[%s4180_s6 + $0x20] sm:$0xff]  }
 0x611   : > { %v3133_v5 = vpop.f32.mrb[27].mxu1  ;;  %v3350_v4 = vld [vmem:[%s4180_s6 + $0x28] sm:$0xff]  }
 0x612   : > { %v1416_v6 = vadd.f32 %v2827_v1, %v1408_v3  ;;  %v3347_v1 = vld [vmem:[%s4176_s29 + $0x20] sm:$0xff]   ;;  %v3349_v3 = vld [vmem:[%s4176_s29 + $0x28] sm:$0xff]  }
 0x614   : > { %v3793_v7 = vadd.f32 %v1416_v6, %v3638_v0  ;;  %v3338_v0 = vld [vmem:[%s4137_s14 + $0x8] sm:$0xff]  }
 0x615   : > { %3137 = vmatpush3.bf16.msra.mxu0 %v3338_v0 }
 0x616   : > { %v1420_v8 = vsel %vm674_vm0, %v3793_v7, 0.0  ;;  %3162 = vmatprep.subr.bf16.mxu0 %v3467_v9 }
 0x617   : > { %1421 = vadd.xlane.f32.xlu0 %v1420_v8 }
 0x6a4   : > { %v1422_v10 = vpop.xlane.xlu0 %1421 }
 0x6a5   : > { %v1423_v11 = vmul.f32 0.03125, %v1422_v10  ;;  %v2845_v10 = vld [vmem:[%s4178_s28 + $0x1] ss:$0 sm:$0xff] }
 0x6a7   : > { %v1424_v12 = vsub.f32 %v3793_v7, %v1423_v11 }
 0x6a9   : > { %v1425_v13 = vmul.f32 %v1424_v12, %v1424_v12 }
 0x6ab   : > { %v1426_v15 = vsel %vm674_vm0, %v1425_v13, 0.0 }
 0x6ac   : > { %1427 = vadd.xlane.f32.xlu1 %v1426_v15 }
 0x739   : > { %v1428_v18 = vpop.xlane.xlu1 %1427 }
 0x73a   : > { %v1429_v19 = vmul.f32 0.03125, %v1428_v18  ;;  %v3353_v18 = vld [vmem:[%s4177_s0 + $0x20] sm:$0xff]  }
 0x73c   : > { %v1430_v20 = vadd.f32 1e-05, %v1429_v19  ;;  %v3354_v19 = vld [vmem:[%s4177_s0 + $0x28] sm:$0xff]  }
 0x73e   : > { %3383 = vrsqrt.f32 %v1430_v20  ;;  %v3355_v20 = vld [vmem:[%s4177_s0 + $0x30] sm:$0xff]  }
 0x748   : > { %v3384_v21 = vpop.eup %3383 }
 0x749   : > { %v1432_v23 = vmul.f32 %v3384_v21, %v1424_v12  ;;  %v2846_v12 = vld [vmem:[%s4179_s30 + $0x1] ss:$0 sm:$0xff]  ;;  %v3356_v21 = vld [vmem:[%s4177_s0 + $0x38] sm:$0xff]   ;;  %s4184_s0 = sld [smem:[#allocation19_spill]] }
 0x74b   : > { %v1439_v25 = vmul.f32 %v2828_v22, %v1432_v23  ;;  %v3357_v22 = vld [vmem:[%s4180_s6 + $0x30] sm:$0xff]   ;;  %v3358_v23 = vld [vmem:[%s4180_s6 + $0x38] sm:$0xff]   ;;  %s3403_s6 = scalar_lea.vmem %s4078_s27, 128 }
 0x74c   : > { %p3404_p11 = scmp.ne.s32.totalorder %s4078_s27, %s3403_s6 }
 0x74d   : > { %v1446_v26 = vadd.f32 %v2829_v24, %v1439_v25 }
 0x74e   : > { %p3405_p12 = pnand %p3404_p11, %p3618_p5 }
 0x74f   : > { %v1447_v27 = vpack.c.bf16 %v1446_v26, %v1446_v26  ;;  %s4083_s4 = scalar_lea.hbm %s4184_s0, %s2960_s22 }
 0x750   : > { %p3406_p13 = pneg %p3405_p12 }
 0x751   : > { %3139 = vmatmul.mubr.msk.bf16.vlgmr.msra.gmra.mrb[20].mxu0 %vm674_vm0, %v1447_v27 }
 0x752   : > { %3166 = vmatprep.mubr.msk.bf16.mxu0 %vm3468_vm1, %v3467_v9  ;;  %3163 = vmatpush3.bf16.msra.mxu0 %v3347_v1 }
 0x753   : > { %3164 = vmatprep.subr.bf16.mxu0 %v3467_v9 }
 0x756   : > { %3165 = vmatpush3.bf16.msra.mxu0 %v3349_v3 }
 0x757   : > { %3170 = vmatprep.subr.bf16.mxu0 %v3467_v9 }
 0x824   : > { %v1508_v36 = vpop.f32.mrb[20].mxu0 }
 0x825   : > { %v1509_v37 = vadd.f32 %v2830_v35, %v1508_v36  ;;  %v3140_v38 = vpop.f32.mrb[21].mxu0  ;;  %v2875_v36 = vld [vmem:[%s4131_s8 + $0x2] ss:$0 sm:$0xff] }
 0x826   : > { %v1511_v39 = vpop.f32.mrb[22].mxu0 }
 0x827   : > { %v1515_v40 = vmul.f32 0.044715, %v1509_v37  ;;  %v3141_v41 = vpop.f32.mrb[23].mxu0  ;;  %v1514_v47 = vmul.f32 0.5, %v1509_v37 }
 0x829   : > { %v1516_v42 = vmul.f32 %v1515_v40, %v1509_v37  ;;  %v2893_v40 = vld [vmem:[%s4132_s9 + $0x2] ss:$0 sm:$0xff] }
 0x82b   : > { %v1517_v43 = vmul.f32 %v1516_v42, %v1509_v37 }
 0x82d   : > { %v1518_v44 = vadd.f32 %v1517_v43, %v1509_v37 }
 0x82f   : > { %v1519_v45 = vmul.f32 0.7978846, %v1518_v44  ;;  %v2857_v44 = vld [vmem:[%s4181_s7 + $0x2] ss:$0 sm:$0xff] }
 0x831   : > { %3385 = vtanh.f32 %v1519_v45 }
 0x83b   : > { %v3386_v46 = vpop.eup %3385 }
 0x83c   : > { %v1521_v48 = vadd.f32 1.0, %v3386_v46 }
 0x83e   : > { %v1522_v49 = vmul.f32 %v1521_v48, %v1514_v47  ;;  %v2876_v47 = vld [vmem:[%s4131_s8 + $0x3] ss:$0 sm:$0xff] }
 0x840   : > { %v1523_v50 = vpack.c.bf16 %v1522_v49, %v1522_v49 }
 0x842   : > { %3159 = vmatmul.mubr.bf16.vlgmr.msra.gmra.mrb[28].mxu1 %v1523_v50 }
 0x843   : > { %3198 = vmatprep.mubr.msk.bf16.mxu1 %vm3468_vm1, %v3467_v9  ;;  %3195 = vmatpush3.bf16.msra.mxu1 %v3348_v2 }
 0x844   : > { %3196 = vmatprep.subr.bf16.mxu1 %v3467_v9 }
 0x847   : > { %3197 = vmatpush3.bf16.msra.mxu1 %v3350_v4 }
 0x848   : > { %3210 = vmatprep.subr.bf16.mxu1 %v3467_v9 }
 0x915   : > { %v1629_v52 = vpop.f32.mrb[28].mxu1 }
 0x916   : > { %v1630_v53 = vadd.f32 %v2834_v51, %v1629_v52  ;;  %v3160_v54 = vpop.f32.mrb[29].mxu1 }
 0x917   : > { %v1632_v55 = vpop.f32.mrb[30].mxu1 }
 0x918   : > { %v3857_v56 = vadd.f32 %v1630_v53, %v3793_v7  ;;  %v3161_v57 = vpop.f32.mrb[31].mxu1 }
 0x91a   : > { %v1640_v58 = vsel %vm674_vm0, %v3857_v56, 0.0 }
 0x91b   : > { %1641 = vadd.xlane.f32.xlu0 %v1640_v58  ;;  %v2858_v58 = vld [vmem:[%s4181_s7 + $0x3] ss:$0 sm:$0xff]  ;;  %s3409_s7 = scalar_lea.vmem %s3408_s23, 256 }
 0x91c   : > { %p3411_p1 = scmp.lt.s32.totalorder %s3409_s7, %s3403_s6 }
 0x91e   : > { %p3412_p2 = por %p3411_p1, %p3410_p0 }
 0x920   : > { %p3413_p3 = pnand %p3412_p2, %p3406_p13 }
 0x9a8   : > { %v1642_v59 = vpop.xlane.xlu0 %1641 }
 0x9a9   : > { %v1643_v60 = vmul.f32 0.03125, %v1642_v59 }
 0x9ab   : > { %v1644_v61 = vsub.f32 %v3857_v56, %v1643_v60 }
 0x9ad   : > { %v1645_v62 = vmul.f32 %v1644_v61, %v1644_v61 }
 0x9af   : > { %v1646_v63 = vsel %vm674_vm0, %v1645_v62, 0.0 }
 0x9b0   : > { %1647 = vadd.xlane.f32.xlu1 %v1646_v63 }
 0xa3d   : > { %v1648_v5 = vpop.xlane.xlu1 %1647 }
 0xa3e   : > { %v1649_v6 = vmul.f32 0.03125, %v1648_v5 }
 0xa40   : > { %v1650_v7 = vadd.f32 1e-05, %v1649_v6 }
 0xa42   : > { %3387 = vrsqrt.f32 %v1650_v7 }
 0xa4c   : > { %v3388_v8 = vpop.eup %3387 }
 0xa4d   : > { %v1652_v11 = vmul.f32 %v3388_v8, %v1644_v61  ;;  %v2894_v61 = vld [vmem:[%s4132_s9 + $0x3] ss:$0 sm:$0xff] }
 0xa4f   : > { %v1659_v13 = vmul.f32 %v2845_v10, %v1652_v11 }
 0xa51   : > { %v1666_v15 = vadd.f32 %v2846_v12, %v1659_v13 }
 0xa53   : > { %v1667_v0 = vpack.c.bf16 %v1666_v15, %v1666_v15 }
 0xa55   : > { %3167 = vmatmul.mubr.msk.bf16.vlgmr.msra.gmra.mrb[24].mxu0 %vm674_vm0, %v1667_v0  ;;  %3199 = vmatmul.mubr.msk.bf16.vlgmr.msra.gmra.mrb[32].mxu1 %vm674_vm0, %v1667_v0 }
 0xa56   : > { %3171 = vmatpush3.bf16.msra.mxu0 %v3351_v16  ;;  %3174 = vmatprep.mubr.msk.bf16.mxu0 %vm3468_vm1, %v3467_v9 }
 0xa57   : > { %3172 = vmatprep.subr.bf16.mxu0 %v3467_v9  ;;  %3212 = vmatprep.mubr.msk.bf16.mxu1 %vm3468_vm1, %v3467_v9 }
 0xa5a   : > { %3173 = vmatpush3.bf16.msra.mxu0 %v3352_v17 }
 0xa5b   : > { %3178 = vmatprep.subr.bf16.mxu0 %v3467_v9 }
 0xa5d   : > { %3175 = vmatmul.mubr.msk.bf16.vlgmr.msra.gmra.mrb[28].mxu0 %vm674_vm0, %v1667_v0 }
 0xa5e   : > { %3179 = vmatpush3.bf16.msra.mxu0 %v3353_v18  ;;  %3182 = vmatprep.mubr.msk.bf16.mxu0 %vm3468_vm1, %v3467_v9 }
 0xa5f   : > { %3180 = vmatprep.subr.bf16.mxu0 %v3467_v9 }
 0xa62   : > { %3181 = vmatpush3.bf16.msra.mxu0 %v3354_v19 }
 0xa63   : > { %3186 = vmatprep.subr.bf16.mxu0 %v3467_v9 }
 0xa65   : > { %3183 = vmatmul.mubr.msk.bf16.vlgmr.msra.gmra.mrb[32].mxu0 %vm674_vm0, %v1667_v0 }
 0xa66   : > { %3187 = vmatpush3.bf16.msra.mxu0 %v3355_v20  ;;  %3190 = vmatprep.mubr.msk.bf16.mxu0 %vm3468_vm1, %v3467_v9 }
 0xa67   : > { %3188 = vmatprep.subr.bf16.mxu0 %v3467_v9 }
 0xa6a   : > { %3189 = vmatpush3.bf16.msra.mxu0 %v3356_v21 }
 0xa6b   : > { %3202 = vmatprep.subr.bf16.mxu0 %v3467_v9 }
 0xa6d   : > { %3191 = vmatmul.mubr.msk.bf16.vlgmr.msra.gmra.mrb[36].mxu0 %vm674_vm0, %v1667_v0 }
 0xa6e   : > { %3203 = vmatpush3.bf16.msra.mxu0 %v3357_v22  ;;  %3206 = vmatprep.mubr.msk.bf16.mxu0 %vm3468_vm1, %v3467_v9 }
 0xa6f   : > { %3204 = vmatprep.subr.bf16.mxu0 %v3467_v9 }
 0xa72   : > { %3205 = vmatpush3.bf16.msra.mxu0 %v3358_v23 }
 0xa73   : > { %3216 = vmatprep.subr.bf16.mxu0 %v3467_v9 }
 0xa75   : > { %3207 = vmatmul.mubr.msk.bf16.vlgmr.msra.gmra.mrb[40].mxu0 %vm674_vm0, %v1667_v0 }
 0xa76   : > { %3218 = vmatprep.mubr.msk.bf16.mxu0 %vm3468_vm1, %v3467_v9 }
 0xb28   : > { %v1741_v24 = vpop.f32.mrb[24].mxu0  ;;  %v1997_v25 = vpop.f32.mrb[32].mxu1 }
 0xb29   : > { %v3168_v26 = vpop.f32.mrb[25].mxu0  ;;  %v3200_v27 = vpop.f32.mrb[33].mxu1  ;;  %v1998_v45 = vadd.f32 %v2893_v40, %v1997_v25  ;;  %v1742_v48 = vadd.f32 %v2857_v44, %v1741_v24 }
 0xb2a   : > { %v1744_v28 = vpop.f32.mrb[26].mxu0  ;;  %v2000_v29 = vpop.f32.mrb[34].mxu1 }
 0xb2b   : > { %v3169_v30 = vpop.f32.mrb[27].mxu0  ;;  %v3201_v31 = vpop.f32.mrb[35].mxu1  ;;  %v2175_v50 = vpack.c.bf16 %v1998_v45, %v1998_v45  ;;  %v2055_v54 = vpack.c.bf16 %v1742_v48, %v1742_v48 }
 0xb2d   : > { %v2181_v59 = vsel %vm1212_vm3, %v2175_v50, 0 }
 0xb30   : > { %v1793_v32 = vpop.f32.mrb[28].mxu0 }
 0xb31   : > { %v3176_v33 = vpop.f32.mrb[29].mxu0  ;;  %v1794_v62 = vadd.f32 %v2858_v58, %v1793_v32  ;;  %v2914_v58 = vld [vmem:[%s4134_s11 + $0x1] ss:$0 sm:$0xff] }
 0xb32   : > { %v1796_v34 = vpop.f32.mrb[30].mxu0 }
 0xb33   : > { %v3177_v35 = vpop.f32.mrb[31].mxu0  ;;  %v2056_v4 = vpack.c.bf16 %v1794_v62, %v1794_v62 }
 0xb38   : > { %v1869_v37 = vpop.f32.mrb[32].mxu0 }
 0xb39   : > { %v1870_v38 = vadd.f32 %v2875_v36, %v1869_v37  ;;  %v3184_v39 = vpop.f32.mrb[33].mxu0 }
 0xb3a   : > { %v1872_v41 = vpop.f32.mrb[34].mxu0  ;;  %v3360_v39 = vld [vmem:[%s4133_s10 + $0x18] sm:$0xff]  }
 0xb3b   : > { %v2057_v42 = vpack.c.bf16 %v1870_v38, %v1870_v38  ;;  %v3185_v43 = vpop.f32.mrb[35].mxu0  ;;  %v3359_v38 = vld [vmem:[%s4133_s10 + $0x10] sm:$0xff]  }
 0xb3d   : > { %v2063_v46 = vsel %vm1089_vm2, %v2057_v42, 0 }
 0xb3e   : > { %3211 = vmatpush3.bf16.xpose.msra.mxu1 %v2063_v46 }
 0xb3f   : > { %3222 = vmatprep.subr.bf16.mxu1 %v3467_v9 }
 0xb40   : > { %v1921_v49 = vpop.f32.mrb[36].mxu0 }
 0xb41   : > { %v1922_v51 = vadd.f32 %v2876_v47, %v1921_v49  ;;  %v3192_v52 = vpop.f32.mrb[37].mxu0 }
 0xb42   : > { %v1924_v53 = vpop.f32.mrb[38].mxu0 }
 0xb43   : > { %v2058_v55 = vpack.c.bf16 %v1922_v51, %v1922_v51  ;;  %v3193_v57 = vpop.f32.mrb[39].mxu0 }
 0xb45   : > { %v2109_v60 = vsel %vm1089_vm2, %v2058_v55, 0  ;;  %3213 = vmatmul.mubr.msk.bf16.vlgmr.msra.gmra.mrb[36].mxu1 %vm1089_vm2, %v2055_v54 }
 0xb46   : > { %3217 = vmatpush3.bf16.xpose.msra.mxu0 %v2109_v60  ;;  %3223 = vmatpush3.bf16.msra.mxu1 %v2181_v59 }
 0xb47   : > { %3228 = vmatprep.subr.bf16.mxu0 %v3467_v9  ;;  %3224 = vmatprep.mubr.msk.bf16.mxu1 %vm3468_vm1, %v3467_v9 }
 0xb48   : > { %v2049_v63 = vpop.f32.mrb[40].mxu0  ;;  %3234 = vmatprep.subr.bf16.mxu1 %v3467_v9 }
 0xb49   : > { %v2050_v1 = vadd.f32 %v2894_v61, %v2049_v63  ;;  %v3208_v2 = vpop.f32.mrb[41].mxu0 }
 0xb4a   : > { %v2052_v3 = vpop.f32.mrb[42].mxu0 }
 0xb4b   : > { %v2176_v5 = vpack.c.bf16 %v2050_v1, %v2050_v1  ;;  %v3209_v6 = vpop.f32.mrb[43].mxu0 }
 0xb4d   : > { %v2227_v7 = vsel %vm1212_vm3, %v2176_v5, 0  ;;  %3219 = vmatmul.mubr.msk.bf16.vlgmr.msra.gmra.mrb[44].mxu0 %vm1089_vm2, %v2056_v4 }
 0xb4e   : > { %3229 = vmatpush3.bf16.msra.mxu0 %v2227_v7  ;;  %3230 = vmatprep.mubr.msk.bf16.mxu0 %vm3468_vm1, %v3467_v9 }
 0xb4f   : > { %3240 = vmatprep.subr.bf16.mxu0 %v3467_v9 }
 0xc18   : > { %v2099_v8 = vpop.f32.mrb[36].mxu1 }
 0xc19   : > { %v2100_v10 = vadd.f32 %v2099_v8, %v3759_v14  ;;  %v3214_v11 = vpop.f32.mrb[37].mxu1  ;;  %v3361_v8 = vld [vmem:[%s4137_s14 + $0x10] sm:$0xff]  }
 0xc1a   : > { %v2102_v12 = vpop.f32.mrb[38].mxu1 }
 0xc1b   : > { %v3215_v13 = vpop.f32.mrb[39].mxu1  ;;  %v2151_v15 = vsel %vm1182_vm4, %v2100_v10, -inf }
 0xc1c   : > { %2152 = vmax.xlane.f32.xlu0 %v2151_v15 }
 0xc20   : > { %v2145_v16 = vpop.f32.mrb[44].mxu0 }
 0xc21   : > { %v2146_v0 = vadd.f32 %v2145_v16, %v3759_v14  ;;  %v3220_v17 = vpop.f32.mrb[45].mxu0  ;;  %v2917_v16 = vld [vmem:[%s4135_s12 + $0x1] ss:$0 sm:$0xff] }
 0xc22   : > { %v2148_v18 = vpop.f32.mrb[46].mxu0  ;;  %v2918_v17 = vld [vmem:[%s4136_s13 + $0x1] ss:$0 sm:$0xff] }
 0xc23   : > { %v3221_v19 = vpop.f32.mrb[47].mxu0  ;;  %v2154_v20 = vsel %vm1182_vm4, %v2146_v0, -inf }
 0xc24   : > { %2155 = vmax.xlane.f32.xlu1 %v2154_v20 }
 0xca9   : > { %v2153_v21 = vpop.xlane.xlu0 %2152 }
 0xcaa   : > { %v2157_v22 = vsub.f32 %v2100_v10, %v2153_v21  ;;  %v3363_v10 = vld [vmem:[%s4139_s16 + $0x40] sm:$0xff]   ;;  %v3364_v21 = vld [vmem:[%s4139_s16 + $0x48] sm:$0xff]  }
 0xcac   : > { %v2159_v23 = vmul.f32 1.442695, %v2157_v22  ;;  %v3365_v22 = vld [vmem:[%s4139_s16 + $0x50] sm:$0xff]  }
 0xcae   : > { %3389 = vpow2.f32 %v2159_v23  ;;  %v3366_v23 = vld [vmem:[%s4139_s16 + $0x58] sm:$0xff]  }
 0xcb1   : > { %v2156_v24 = vpop.xlane.xlu1 %2155 }
 0xcb2   : > { %v2158_v25 = vsub.f32 %v2146_v0, %v2156_v24  ;;  %v3367_v24 = vld [vmem:[%s4139_s16 + $0x60] sm:$0xff]  }
 0xcb4   : > { %v2161_v26 = vmul.f32 1.442695, %v2158_v25  ;;  %v3368_v25 = vld [vmem:[%s4139_s16 + $0x68] sm:$0xff]  }
 0xcb6   : > { %3391 = vpow2.f32 %v2161_v26  ;;  %v3369_v26 = vld [vmem:[%s4139_s16 + $0x70] sm:$0xff]  }
 0xcb8   : > { %v3390_v27 = vpop.eup %3389 }
 0xcb9   : > { %v2163_v28 = vsel %vm1182_vm4, %v3390_v27, 0.0 }
 0xcba   : > { %2164 = vadd.xlane.f32.xlu0 %v2163_v28  ;;  %v2924_v28 = vld [vmem:[%s4138_s15 + $0x1] ss:$0 sm:$0xff] }
 0xcc0   : > { %v3392_v29 = vpop.eup %3391 }
 0xcc1   : > { %v2166_v14 = vsel %vm1182_vm4, %v3392_v29, 0.0 }
 0xcc2   : > { %2167 = vadd.xlane.f32.xlu1 %v2166_v14 }
 0xd47   : > { %v2165_v30 = vpop.xlane.xlu0 %2164 }
 0xd48   : > { %3393 = vrcp.f32 %v2165_v30 }
 0xd4f   : > { %v2168_v31 = vpop.xlane.xlu1 %2167 }
 0xd50   : > { %3395 = vrcp.f32 %v2168_v31 }
 0xd52   : > { %v3394_v32 = vpop.eup %3393 }
 0xd53   : > { %v2171_v33 = vmul.f32 %v3394_v32, %v3390_v27  ;;  %v3370_v27 = vld [vmem:[%s4139_s16 + $0x78] sm:$0xff]  }
 0xd55   : > { %v2173_v34 = vpack.c.bf16 %v2171_v33, %v2171_v33 }
 0xd57   : > { %3225 = vmatmul.mubr.msk.bf16.vlgmr.msra.gmra.mrb[40].mxu1 %vm1182_vm4, %v2173_v34 }
 0xd58   : > { %3236 = vmatprep.mubr.msk.bf16.mxu1 %vm3468_vm1, %v3467_v9  ;;  %3235 = vmatpush3.bf16.msra.mxu1 %v3359_v38 }
 0xd59   : > { %3246 = vmatprep.subr.bf16.mxu1 %v3467_v9 }
 0xd5a   : > { %v3396_v35 = vpop.eup %3395 }
 0xd5b   : > { %v2172_v36 = vmul.f32 %v3396_v35, %v3392_v29 }
 0xd5d   : > { %v2174_v37 = vpack.c.bf16 %v2172_v36, %v2172_v36 }
 0xd5f   : > { %3231 = vmatmul.mubr.msk.bf16.vlgmr.msra.gmra.mrb[48].mxu0 %vm1182_vm4, %v2174_v37 }
 0xd60   : > { %3242 = vmatprep.mubr.msk.bf16.mxu0 %vm3468_vm1, %v3467_v9  ;;  %3241 = vmatpush3.bf16.msra.mxu0 %v3360_v39 }
 0xd61   : > { %3254 = vmatprep.subr.bf16.mxu0 %v3467_v9 }
 0xe2a   : > { %v2217_v40 = vpop.f32.mrb[40].mxu1 }
 0xe2b   : > { %v2269_v41 = vpack.c.bf16 %v2217_v40, %v2217_v40  ;;  %v3226_v42 = vpop.f32.mrb[41].mxu1 }
 0xe2c   : > { %v2220_v43 = vpop.f32.mrb[42].mxu1 }
 0xe2d   : > { %v3227_v44 = vpop.f32.mrb[43].mxu1  ;;  %3237 = vmatmul.mubr.msk.bf16.vlgmr.msra.gmra.mrb[44].mxu1 %vm1089_vm2, %v2269_v41  ;;  %v2945_v43 = vld [vmem:[%s4140_s17 + $0x1] ss:$0 sm:$0xff] }
 0xe2e   : > { %3250 = vmatprep.mubr.msk.bf16.mxu1 %vm3468_vm1, %v3467_v9  ;;  %3247 = vmatpush3.bf16.msra.mxu1 %v3361_v8 }
 0xe2f   : > { %3248 = vmatprep.subr.bf16.mxu1 %v3467_v9 }
 0xe32   : > { %v2263_v45 = vpop.f32.mrb[48].mxu0 }
 0xe33   : > { %v2270_v46 = vpack.c.bf16 %v2263_v45, %v2263_v45  ;;  %v3232_v47 = vpop.f32.mrb[49].mxu0 }
 0xe34   : > { %v2266_v48 = vpop.f32.mrb[50].mxu0 }
 0xe35   : > { %v3233_v49 = vpop.f32.mrb[51].mxu0  ;;  %3243 = vmatmul.mubr.msk.bf16.vlgmr.msra.gmra.mrb[52].mxu0 %vm1089_vm2, %v2270_v46 }
 0xe36   : > { %3270 = vmatprep.mubr.msk.bf16.mxu0 %vm3468_vm1, %v3467_v9  ;;  %3255 = vmatpush3.bf16.msra.mxu0 %v3363_v10 }
 0xe37   : > { %3256 = vmatprep.subr.bf16.mxu0 %v3467_v9 }
 0xe3a   : > { %3257 = vmatpush3.bf16.msra.mxu0 %v3364_v21 }
 0xe3b   : > { %3258 = vmatprep.subr.bf16.mxu0 %v3467_v9 }
 0xe3e   : > { %3259 = vmatpush3.bf16.msra.mxu0 %v3365_v22 }
 0xe3f   : > { %3260 = vmatprep.subr.bf16.mxu0 %v3467_v9 }
 0xe42   : > { %3261 = vmatpush3.bf16.msra.mxu0 %v3366_v23 }
 0xe43   : > { %3262 = vmatprep.subr.bf16.mxu0 %v3467_v9 }
 0xe46   : > { %3263 = vmatpush3.bf16.msra.mxu0 %v3367_v24 }
 0xe47   : > { %3264 = vmatprep.subr.bf16.mxu0 %v3467_v9 }
 0xe4a   : > { %3265 = vmatpush3.bf16.msra.mxu0 %v3368_v25 }
 0xe4b   : > { %3266 = vmatprep.subr.bf16.mxu0 %v3467_v9 }
 0xe4e   : > { %3267 = vmatpush3.bf16.msra.mxu0 %v3369_v26 }
 0xe4f   : > { %3268 = vmatprep.subr.bf16.mxu0 %v3467_v9 }
 0xe52   : > { %3269 = vmatpush3.bf16.msra.mxu0 %v3370_v27 }
 0xf00   : > { %v2319_v50 = vpop.f32.mrb[44].mxu1 }
 0xf01   : > { %v3238_v51 = vpop.f32.mrb[45].mxu1  ;;  %v2374_v55 = vsel %vm674_vm0, %v2319_v50, 0.0 }
 0xf02   : > { %v2322_v52 = vpop.f32.mrb[46].mxu1 }
 0xf03   : > { %v3239_v53 = vpop.f32.mrb[47].mxu1 }
 0xf08   : > { %v2368_v54 = vpop.f32.mrb[52].mxu0 }
 0xf09   : > { %v2375_v57 = vsel %vm674_vm0, %v2368_v54, 0.0  ;;  %v3244_v59 = vpop.f32.mrb[53].mxu0 }
 0xf0a   : > { %v2376_v60 = vadd.f32 %v2375_v57, %v2374_v55  ;;  %v2371_v61 = vpop.f32.mrb[54].mxu0  ;;  %v3371_v57 = vld [vmem:[%s4143_s20] sm:$0xff]  }
 0xf0b   : > { %v3245_v62 = vpop.f32.mrb[55].mxu0 }
 0xf0c   : > { %v2385_v63 = vadd.f32 %v2914_v58, %v2376_v60  ;;  %v3372_v58 = vld [vmem:[%s4143_s20 + $0x8] sm:$0xff]  }
 0xf0e   : > { %v3999_v1 = vadd.f32 %v2385_v63, %v3857_v56  ;;  %v3362_v56 = vld [vmem:[%s4137_s14 + $0x18] sm:$0xff]   ;;  %v2954_v63 = vld [vmem:[%s4141_s18] ss:$0 sm:$0xff] }
 0xf0f   : > { %3249 = vmatpush3.bf16.msra.mxu1 %v3362_v56 }
 0xf10   : > { %v2391_v2 = vsel %vm674_vm0, %v3999_v1, 0.0  ;;  %3274 = vmatprep.subr.bf16.mxu1 %v3467_v9 }
 0xf11   : > { %2392 = vadd.xlane.f32.xlu0 %v2391_v2 }
 0xf9e   : > { %v2393_v3 = vpop.xlane.xlu0 %2392 }
 0xf9f   : > { %v2394_v4 = vmul.f32 0.03125, %v2393_v3 }
 0xfa1   : > { %v2395_v5 = vsub.f32 %v3999_v1, %v2394_v4 }
 0xfa3   : > { %v2396_v6 = vmul.f32 %v2395_v5, %v2395_v5 }
 0xfa5   : > { %v2397_v7 = vsel %vm674_vm0, %v2396_v6, 0.0 }
 0xfa6   : > { %2398 = vadd.xlane.f32.xlu1 %v2397_v7 }
0x1033   : > { %v2399_v11 = vpop.xlane.xlu1 %2398 }
0x1034   : > { %v2400_v12 = vmul.f32 0.03125, %v2399_v11 }
0x1036   : > { %v2401_v13 = vadd.f32 1e-05, %v2400_v12 }
0x1038   : > { %3397 = vrsqrt.f32 %v2401_v13 }
0x1042   : > { %v3398_v15 = vpop.eup %3397 }
0x1043   : > { %v2403_v0 = vmul.f32 %v3398_v15, %v2395_v5 }
0x1045   : > { %v2410_v18 = vmul.f32 %v2917_v16, %v2403_v0 }
0x1047   : > { %v2417_v19 = vadd.f32 %v2918_v17, %v2410_v18 }
0x1049   : > { %v2418_v20 = vpack.c.bf16 %v2417_v19, %v2417_v19 }
0x104b   : > { %3251 = vmatmul.mubr.msk.bf16.vlgmr.msra.gmra.mrb[48].mxu1 %vm674_vm0, %v2418_v20 }
0x104c   : > { %3278 = vmatprep.mubr.msk.bf16.mxu1 %vm3468_vm1, %v3467_v9  ;;  %3275 = vmatpush3.bf16.msra.mxu1 %v3371_v57 }
0x104d   : > { %3276 = vmatprep.subr.bf16.mxu1 %v3467_v9  ;;  %v2955_v9 = vld [vmem:[%s4142_s19] ss:$0 sm:$0xff] }
0x1050   : > { %3277 = vmatpush3.bf16.msra.mxu1 %v3372_v58 }
0x111e   : > { %v2481_v29 = vpop.f32.mrb[48].mxu1 }
0x111f   : > { %v2482_v14 = vadd.f32 %v2924_v28, %v2481_v29  ;;  %v3252_v30 = vpop.f32.mrb[49].mxu1 }
0x1120   : > { %v2484_v31 = vpop.f32.mrb[50].mxu1 }
0x1121   : > { %v2488_v32 = vmul.f32 0.044715, %v2482_v14  ;;  %v3253_v33 = vpop.f32.mrb[51].mxu1  ;;  %v2487_v39 = vmul.f32 0.5, %v2482_v14 }
0x1123   : > { %v2489_v34 = vmul.f32 %v2488_v32, %v2482_v14 }
0x1125   : > { %v2490_v35 = vmul.f32 %v2489_v34, %v2482_v14 }
0x1127   : > { %v2491_v36 = vadd.f32 %v2490_v35, %v2482_v14 }
0x1129   : > { %v2492_v37 = vmul.f32 0.7978846, %v2491_v36 }
0x112b   : > { %3399 = vtanh.f32 %v2492_v37 }
0x1135   : > { %v3400_v38 = vpop.eup %3399 }
0x1136   : > { %v2494_v40 = vadd.f32 1.0, %v3400_v38 }
0x1138   : > { %v2495_v41 = vmul.f32 %v2494_v40, %v2487_v39 }
0x113a   : > { %v2496_v42 = vpack.c.bf16 %v2495_v41, %v2495_v41 }
0x113c   : > { %3271 = vmatmul.mubr.bf16.vlgmr.msra.gmra.mrb[56].mxu0 %v2496_v42 }
0x120f   : > { %v2604_v44 = vpop.f32.mrb[56].mxu0 }
0x1210   : > { %v2605_v45 = vadd.f32 %v2945_v43, %v2604_v44  ;;  %v3272_v46 = vpop.f32.mrb[57].mxu0 }
0x1211   : > { %v2607_v47 = vpop.f32.mrb[58].mxu0 }
0x1212   : > { %v3273_v48 = vpop.f32.mrb[59].mxu0  ;;  %v2610_v49 = vadd.f32 %v2605_v45, %v3999_v1 }
0x1214   : > { %v2613_v50 = vsel %vm674_vm0, %v2610_v49, 0.0 }
0x1215   : > { %2614 = vadd.xlane.f32.xlu0 %v2613_v50 }
0x12a2   : > { %v2615_v51 = vpop.xlane.xlu0 %2614 }
0x12a3   : > { %v2616_v52 = vmul.f32 0.03125, %v2615_v51 }
0x12a5   : > { %v2617_v53 = vsub.f32 %v2610_v49, %v2616_v52 }
0x12a7   : > { %v2618_v54 = vmul.f32 %v2617_v53, %v2617_v53 }
0x12a9   : > { %v2619_v55 = vsel %vm674_vm0, %v2618_v54, 0.0 }
0x12aa   : > { %2620 = vadd.xlane.f32.xlu1 %v2619_v55 }
0x1337   : > { %v2621_v59 = vpop.xlane.xlu1 %2620 }
0x1338   : > { %v2622_v60 = vmul.f32 0.03125, %v2621_v59 }
0x133a   : > { %v2623_v61 = vadd.f32 1e-05, %v2622_v60 }
0x133c   : > { %3401 = vrsqrt.f32 %v2623_v61 }
0x1346   : > { %v3402_v62 = vpop.eup %3401 }
0x1347   : > { %v2625_v1 = vmul.f32 %v3402_v62, %v2617_v53 }
0x1349   : > { %v2632_v2 = vmul.f32 %v2954_v63, %v2625_v1 }
0x134b   : > { %v2639_v3 = vadd.f32 %v2955_v9, %v2632_v2 }
0x134d   : > { %v2640_v4 = vpack.c.bf16 %v2639_v3, %v2639_v3 }
0x134f   : > { %3279 = vmatmul.mubr.msk.bf16.vlgmr.msra.gmra.mrb[52].mxu1 %vm674_vm0, %v2640_v4 }
0x1422   : > { %v2694_v5 = vpop.f32.mrb[52].mxu1 }
0x1423   : > { %2700 = vst [vmem:[%s660_s2] sm:$0xff] %v2694_v5  ;;  %v3280_v6 = vpop.f32.mrb[53].mxu1 }
0x1424   : > { %v2697_v7 = vpop.f32.mrb[54].mxu1 }
0x1425   : > { %3416 = shalt.err (!%p3413_p3)
}
0x1426   : > { %s3417_s21 = scalar_lea.hbm %s4083_s4, 128  ;;  %s3421_s1 = scalar_lea.hbm %s4184_s0, 256 }
0x1427   : > { %p3418_p4 = scmp.ne.s32.totalorder %s4083_s4, %s3417_s21  ;;  %p3422_p9 = scmp.lt.u32.totalorder %s4083_s4, %s4184_s0 }
0x1428   : > { %p3423_p10 = scmp.lt.u32.totalorder %s3421_s1, %s3417_s21  ;;  %p3425_p12 = scmp.lt.u32.totalorder %s3417_s21, %s4083_s4 }
0x1429   : > { %p3419_p7 = pnand %p3418_p4, %p3618_p5 }
0x142a   : > { %p3424_p11 = por %p3423_p10, %p3422_p9 }
0x142b   : > { %p3420_p8 = pneg %p3419_p7 }
0x142c   : > { %p3426_p13 = por %p3425_p12, %p3424_p11 }
0x142e   : > { %p3427_p0 = pnand %p3426_p13, %p3420_p8 }
0x1430   : > { %3430 = shalt.err (!%p3427_p0)
}
0x1431   : > { %3282 = dma.vmem_to_hbm [thread:$0]  (%p3618_p5), %s4078_s27, 128, %s4083_s4, %s2702_s26   ;;  %v3281_v8 = vpop.f32.mrb[55].mxu1 }
0x1432 PF: > { %s4185_s6 = sld [smem:[#allocation7_spill]]  ;;  %s4186_s7 = sld [smem:[#allocation5_spill]] }
0x1438   : > { %p3288_p1 = scmp.ge.s32.totalorder %s4185_s6, 2  ;;  %s2727_s2 = sand.u32 1, %s4186_s7  }
0x1439   : > { %s2728_s22 = scalar_lea.sflag [#allocation3], %s2727_s2 }
0x143a   : > { %p3285_p2 = pnand %p3288_p1, %p3622_p6 }
0x143c   : > { %3448 = dma.done.wait (!%p3285_p2), %s2728_s22, 128  }
0x143d   : > { %3450 = vsyncadd (!%p3285_p2), %s2728_s22, 4294967168  ;;  %s4188_s27 = sld [smem:[#allocation8_spill]]  ;;  %s4189_s21 = sld [smem:[#allocation6_spill]] }
0x143e   : > { %s4190_s26 = sld [smem:[#allocation9_spill]]  ;;  %s4191_s2 = smov %s3457_s25 }
0x1443   : > { %p31_p3 = scmp.ge.s32.totalorder %s4188_s27, 4   ;;  %s4192_s25 = smov %s4189_s21 }
0x1445   :  { %33 = sbr.rel (!%p31_p3) target bundleno = 13 (0xd), region = 158 }
0x144c   :  { %2733 = vsyncpa [#allocation3], 1 }
0x144d   :  { %2735 = vsyncpa [#allocation3 + $0x1], 1 }

</bundles_post_ra>
